<compile_context>
chip_gen: v6e
topology: v6e:2x2x1
jax: 0.10.0
libtpu: 0.0.40
codegen_flags: <defaults>
</compile_context>

<pallas_src>
import math
import numpy as np
import jax
import jax.numpy as jnp
from jax import lax
from jax.experimental import pallas as pl
from jax.experimental.pallas import tpu as pltpu

# ----------------------------- config (small) --------------------------------
B, T = 2, 8
N_EMBD = 32
N_HEAD = 4
HEAD_DIM = N_EMBD // N_HEAD          # 8
FFN_FACTOR = 2
HIDDEN = FFN_FACTOR * N_EMBD         # 64
N_EXPERTS = 4
M_SUB = 1
N_TOTAL_EXPERTS = N_EXPERTS * M_SUB  # 4
N_SHARED = 1 * M_SUB                 # 1
TOP_K = 2
ROUTE_SCALE = 1.0
ROPE_BASE = 10000.0
EPS = 1e-5
N_TOK = B * T                        # 16
EH = N_TOTAL_EXPERTS * HIDDEN        # 256


# ----------------------------- fused single kernel ---------------------------
def block_kernel(x_ref, wbig_ref, cos2_ref, sin2_ref, add2_ref, mask_ref,
                 bvo_ref, wabg_ref, babg_ref, wproj_ref, bproj_ref, sel_ref,
                 o_ref, bal_ref):
    C = N_EMBD
    x = x_ref[...]                                              # (N_TOK, C) flat tokens

    # ---------------- attention branch: RMSNorm -> MHA+RoPE -> residual ------
    # ln1 gain is folded into wbig, so only the rsqrt normalization remains.
    ms = jnp.mean(x * x, axis=-1, keepdims=True)
    xn = x * lax.rsqrt(ms + EPS)

    # one lane-dense projection: [q | k | q_swap | k_swap | V@Wo (per head)]
    proj = jnp.dot(xn, wbig_ref[...], preferred_element_type=jnp.float32)

    # RoPE for q and k together in one 2C-wide VPU op.  The qkv bias and the
    # 1/sqrt(head_dim) score scale are pre-folded into cos2/sin2/add2.
    qk = (proj[:, :2 * C] * cos2_ref[...]
          + proj[:, 2 * C:4 * C] * sin2_ref[...]
          + add2_ref[...])                                       # (N_TOK, 2C)

    bias = mask_ref[...]               # (N_TOK, N_TOK): 0 where causal & same batch, -1e30 else
    x1 = x + bvo_ref[...]              # residual + folded (b_v @ Wo + b_out) bias

    for h in range(N_HEAD):
        qh = qk[:, h * HEAD_DIM:(h + 1) * HEAD_DIM]              # already scaled
        kh = qk[:, C + h * HEAD_DIM:C + (h + 1) * HEAD_DIM]
        s = lax.dot_general(qh, kh, (((1,), (1,)), ((), ())),
                            preferred_element_type=jnp.float32) + bias
        p = jnp.exp(s - jnp.max(s, axis=-1, keepdims=True))
        p = p / jnp.sum(p, axis=-1, keepdims=True)
        vo = proj[:, (4 + h) * C:(5 + h) * C]                    # (N_TOK, C): V_h @ Wo_h
        x1 = x1 + jnp.dot(p, vo, preferred_element_type=jnp.float32)

    # ---------------- MoE branch: RMSNorm -> router -> experts -> residual ---
    ms2 = jnp.mean(x1 * x1, axis=-1, keepdims=True)
    r2 = x1 * lax.rsqrt(ms2 + EPS)                               # ln2 folded into wabg

    # one matmul for [expert fc (a) | expert fc (b) | router logits]
    fcg = jnp.dot(r2, wabg_ref[...], preferred_element_type=jnp.float32) + babg_ref[...]
    fa = fcg[:, :EH]                                             # (N_TOK, E*H)
    fb = fcg[:, EH:2 * EH]                                       # (N_TOK, E*H)
    logits = fcg[:, 2 * EH:]                                     # (N_TOK, E), tile-aligned

    lmx = jnp.max(logits, axis=-1, keepdims=True)
    le = jnp.exp(logits - lmx)
    probs = le / jnp.sum(le, axis=-1, keepdims=True)             # (N_TOK, E)

    lane = lax.broadcasted_iota(jnp.int32, probs.shape, 1)
    is_shared = lane < N_SHARED
    neg_inf = jnp.float32(-jnp.inf)

    # iterative top-k over routable (non-shared) experts, lowest-index tie-break
    remaining = jnp.where(is_shared, neg_inf, probs)
    masked = jnp.zeros_like(probs)
    for _ in range(TOP_K):
        m = jnp.max(remaining, axis=-1, keepdims=True)
        cand = jnp.where(remaining == m, lane, N_TOTAL_EXPERTS)
        first = jnp.min(cand, axis=-1, keepdims=True)
        pick = lane == first
        masked = jnp.where(pick, probs, masked)
        remaining = jnp.where(pick, neg_inf, remaining)

    combined = jnp.where(is_shared, probs, masked) * ROUTE_SCALE
    gating = combined / (jnp.sum(combined, axis=-1, keepdims=True) + 1e-8)

    # experts: silu-gate, scale by gating (spread to E*H lanes via selector matmul),
    # then one (E*H -> C) projection matmul; per-expert proj bias via gating matmul.
    hid = fa * (fb * jax.nn.sigmoid(fb))                         # a * silu(b), (N_TOK, E*H)
    g_wide = jnp.dot(gating, sel_ref[...], preferred_element_type=jnp.float32)
    moe = (jnp.dot(hid * g_wide, wproj_ref[...], preferred_element_type=jnp.float32)
           + jnp.dot(gating, bproj_ref[...], preferred_element_type=jnp.float32))

    o_ref[...] = x1 + moe                                        # second residual

    # balance loss (all tokens local -> plain writes, no cross-step accumulation)
    usage = jnp.sum((combined > 0).astype(jnp.float32), axis=0, keepdims=True)  # (1, E)
    score = jnp.sum(probs, axis=0, keepdims=True)                               # (1, E)
    coef = float(N_TOTAL_EXPERTS) / (float(N_SHARED + TOP_K) * float(N_TOK))
    bal_ref[...] = jnp.sum(coef * usage * (score / float(N_TOK)),
                           axis=-1, keepdims=True)                              # (1, 1)


# ----------------------------- host-side one-time weight prep ----------------
def make_rope_cache(t, hd, base=ROPE_BASE):
    half = hd // 2
    inv_freq = base ** (-jnp.arange(half, dtype=jnp.float32) * 2.0 / hd)
    pos = jnp.arange(t, dtype=jnp.float32)
    ang = pos[:, None] * inv_freq[None, :]             # (T, hd/2)
    cache = jnp.zeros((t, hd), jnp.float32)
    cache = cache.at[:, 0::2].set(jnp.sin(ang))
    cache = cache.at[:, 1::2].set(jnp.cos(ang))
    return cache


def init_params(key):
    ks = jax.random.split(key, 10)
    std = 0.02
    p = {}
    # module default is ones; use a small perturbation so the ln-folding path is
    # actually exercised by the correctness check.
    p['ln1_w'] = 1.0 + 0.05 * jax.random.normal(ks[8], (1, N_EMBD), jnp.float32)
    p['ln2_w'] = 1.0 + 0.05 * jax.random.normal(ks[9], (1, N_EMBD), jnp.float32)
    p['w_qkv'] = jax.random.normal(ks[0], (3 * N_EMBD, N_EMBD), jnp.float32) * std
    p['b_qkv'] = jax.random.normal(ks[1], (3 * N_EMBD,), jnp.float32) * std
    p['w_out'] = jax.random.normal(ks[2], (N_EMBD, N_EMBD), jnp.float32) * std
    p['b_out'] = jax.random.normal(ks[3], (N_EMBD,), jnp.float32) * std
    p['w_gate'] = jax.random.normal(ks[4], (N_TOTAL_EXPERTS, N_EMBD), jnp.float32) * std
    p['b_gate'] = jax.random.normal(ks[5], (N_TOTAL_EXPERTS,), jnp.float32) * std
    p['fc_w'] = jax.random.normal(ks[6], (N_TOTAL_EXPERTS, 2 * HIDDEN, N_EMBD), jnp.float32) * std
    p['fc_b'] = jnp.zeros((N_TOTAL_EXPERTS, 2 * HIDDEN), jnp.float32)
    p['proj_w'] = jax.random.normal(ks[7], (N_TOTAL_EXPERTS, HIDDEN, N_EMBD), jnp.float32) * std
    p['proj_b'] = jnp.zeros((N_TOTAL_EXPERTS, N_EMBD), jnp.float32)
    return p


def prepare_params(p, rope_cache):
    """One-time host-side fusion of all weights into lane-dense matrices."""
    C, H, hd = N_EMBD, N_HEAD, HEAD_DIM
    E, Hd = N_TOTAL_EXPERTS, HIDDEN
    scale = 1.0 / math.sqrt(hd)

    wq = p['w_qkv'][:C].T                    # (C, C): x @ wq = q
    wk = p['w_qkv'][C:2 * C].T
    wv = p['w_qkv'][2 * C:].T
    bq = p['b_qkv'][:C]
    bk = p['b_qkv'][C:2 * C]
    bv = p['b_qkv'][2 * C:]
    wo = p['w_out'].T                        # (C, C): y @ wo = out_proj
    bo = p['b_out'].reshape(1, C)

    pair_swap = np.arange(C) ^ 1             # 0<->1, 2<->3, ... (RoPE partner lanes)

    # fold V and the output projection:  y @ Wo == sum_h p_h @ (xn @ (Wv_h @ Wo_h))
    wvo = jnp.concatenate(
        [wv[:, h * hd:(h + 1) * hd] @ wo[h * hd:(h + 1) * hd, :] for h in range(H)],
        axis=1)                                                        # (C, H*C)
    bvo = bv.reshape(1, C) @ wo + bo                                   # (1, C)

    # [q | k | q_swap | k_swap | V@Wo] with the ln1 gain folded into the rows
    wbig = jnp.concatenate([wq, wk, wq[:, pair_swap], wk[:, pair_swap], wvo], axis=1)
    wbig = p['ln1_w'].reshape(C, 1) * wbig                             # (C, 8C)

    # RoPE cos / signed-sin in the original interleaved layout, tiled across heads,
    # tiled across the batch dimension of the flat (B*T, C) token slab.  The
    # 1/sqrt(hd) score scale is folded into the q half; the qkv bias into add2.
    sin = rope_cache[:, 0::2]
    cos = rope_cache[:, 1::2]
    cos_i = jnp.repeat(cos, 2, axis=-1)                                # [c0,c0,c1,c1,...]
    sin_i = jnp.stack([-sin, sin], axis=-1).reshape(T, hd)             # [-s0,s0,-s1,s1,...]
    cos_full = jnp.tile(jnp.tile(cos_i, (1, H)), (B, 1))               # (N_TOK, C)
    sin_full = jnp.tile(jnp.tile(sin_i, (1, H)), (B, 1))               # (N_TOK, C)
    cos2 = jnp.concatenate([cos_full * scale, cos_full], axis=1)       # (N_TOK, 2C)
    sin2 = jnp.concatenate([sin_full * scale, sin_full], axis=1)       # (N_TOK, 2C)
    bqk = jnp.concatenate([bq, bk]).reshape(1, 2 * C)
    bqk_sw = jnp.concatenate([bq[pair_swap], bk[pair_swap]]).reshape(1, 2 * C)
    add2 = bqk * cos2 + bqk_sw * sin2                                  # (N_TOK, 2C)

    # additive block-diagonal causal mask for the flat (N_TOK, N_TOK) scores
    tril = np.tril(np.ones((T, T), np.float32))
    allowed = np.kron(np.eye(B, dtype=np.float32), tril)               # (N_TOK, N_TOK)
    mask_bias = jnp.asarray(np.where(allowed > 0, 0.0, -1e30).astype(np.float32))

    # MoE weights: [fc_a | fc_b | gate] fused, ln2 gain folded into the rows
    wg = p['w_gate'].T                                                 # (C, E)
    bg = p['b_gate'].reshape(1, E)
    wa = jnp.transpose(p['fc_w'][:, :Hd, :], (2, 0, 1)).reshape(C, E * Hd)
    wb = jnp.transpose(p['fc_w'][:, Hd:, :], (2, 0, 1)).reshape(C, E * Hd)
    wabg = jnp.concatenate([wa, wb, wg], axis=1)                       # (C, 2*E*Hd + E)
    wabg = p['ln2_w'].reshape(C, 1) * wabg
    babg = jnp.concatenate([p['fc_b'][:, :Hd].reshape(-1),
                            p['fc_b'][:, Hd:].reshape(-1),
                            bg.reshape(-1)]).reshape(1, 2 * E * Hd + E)
    wproj = p['proj_w'].reshape(E * Hd, C)                             # (256, 32)
    bproj = p['proj_b']                                                # (E, C)
    sel = np.zeros((E, E * Hd), np.float32)                            # gating -> wide scale
    for e in range(E):
        sel[e, e * Hd:(e + 1) * Hd] = 1.0

    return dict(wbig=wbig, cos2=cos2, sin2=sin2, add2=add2, mask=mask_bias,
                bvo=bvo, wabg=wabg, babg=babg, wproj=wproj, bproj=bproj,
                sel=jnp.asarray(sel))


# ----------------------------- pallas_call wrapper ---------------------------
def _run_block(x_flat, w):
    vmem = pl.BlockSpec(memory_space=pltpu.MemorySpace.VMEM)
    return pl.pallas_call(
        block_kernel,
        out_shape=(jax.ShapeDtypeStruct((N_TOK, N_EMBD), jnp.float32),
                   jax.ShapeDtypeStruct((1, 1), jnp.float32)),
        in_specs=[vmem] * 12,
        out_specs=(vmem, vmem),
    )(x_flat, w['wbig'], w['cos2'], w['sin2'], w['add2'], w['mask'],
      w['bvo'], w['wabg'], w['babg'], w['wproj'], w['bproj'], w['sel'])


@jax.jit
def block_forward(x, prep):
    x_flat = x.reshape(N_TOK, N_EMBD)
    out_flat, bal = _run_block(x_flat, prep)
    return out_flat.reshape(B, T, N_EMBD), bal[0, 0]


# ----------------------------- pure-JAX reference ----------------------------
def reference_forward(x, p, rope_cache):
    def rms(z, w):
        return z * lax.rsqrt(jnp.mean(z * z, -1, keepdims=True) + EPS) * w

    def rope(xh, cache):
        sin = cache[:, 0::2]
        cos = cache[:, 1::2]
        x0 = xh[..., 0::2]
        x1 = xh[..., 1::2]
        o0 = x0 * cos - x1 * sin
        o1 = x1 * cos + x0 * sin
        out = jnp.zeros_like(xh)
        out = out.at[..., 0::2].set(o0)
        out = out.at[..., 1::2].set(o1)
        return out

    xn = rms(x, p['ln1_w'])
    qkv = xn @ p['w_qkv'].T + p['b_qkv']
    q, k, v = jnp.split(qkv, 3, axis=-1)

    def heads(z):
        return z.reshape(B, T, N_HEAD, HEAD_DIM).transpose(0, 2, 1, 3)

    q, k, v = heads(q), heads(k), heads(v)
    q = rope(q, rope_cache)
    k = rope(k, rope_cache)
    s = jnp.einsum('bhqd,bhkd->bhqk', q, k) / math.sqrt(HEAD_DIM)
    mask = jnp.tril(jnp.ones((T, T), bool))
    s = jnp.where(mask, s, -jnp.inf)
    a = jax.nn.softmax(s, axis=-1)
    y = jnp.einsum('bhqk,bhkd->bhqd', a, v)
    y = y.transpose(0, 2, 1, 3).reshape(B, T, N_EMBD)
    x1 = x + (y @ p['w_out'].T + p['b_out'])

    xn2 = rms(x1, p['ln2_w'])
    N = B * T
    xflat = xn2.reshape(N, N_EMBD)
    logits = xflat @ p['w_gate'].T + p['b_gate']
    probs = jax.nn.softmax(logits, axis=-1)
    score_sum = probs.sum(0)
    shared = probs[:, :N_SHARED]
    rest = probs[:, N_SHARED:]
    vals, idx = lax.top_k(rest, TOP_K)
    maskm = jnp.zeros_like(rest)
    maskm = maskm.at[jnp.arange(N)[:, None], idx].set(vals)
    combined = jnp.concatenate([shared, maskm], -1) * ROUTE_SCALE
    gating = combined / (combined.sum(-1, keepdims=True) + 1e-8)
    usage = (combined > 0).astype(jnp.float32).sum(0)
    fc_out = jnp.einsum('nd,ecd->nec', xflat, p['fc_w']) + p['fc_b'][None]
    a_, b_ = jnp.split(fc_out, 2, axis=-1)
    hid = a_ * jax.nn.silu(b_)
    oe = jnp.einsum('neh,ehc->nec', hid, p['proj_w']) + p['proj_b'][None]
    out = (oe * gating[..., None]).sum(1).reshape(B, T, N_EMBD)
    x2 = x1 + out
    Kp = float(N_SHARED + TOP_K)
    Np = float(N_TOTAL_EXPERTS)
    bal = jnp.sum((Np / (Kp * N)) * usage * (score_sum / N))
    return x2, bal


# TODO(synk): the data-dependent 'chunk' MoE implementation (sort / scatter_add token
# grouping) is not ported; the module's default moe_impl='parallel' path is implemented.
# Dropout is identity (p=0.0 / inference) and is omitted.

if __name__ == "__main__":
    key = jax.random.PRNGKey(0)
    kx, kp = jax.random.split(key)
    x = jax.random.normal(kx, (B, T, N_EMBD), jnp.float32)
    params = init_params(kp)
    rope_cache = make_rope_cache(T, HEAD_DIM)

    prep = prepare_params(params, rope_cache)   # one-time host-side weight fusion

    out, bal = block_forward(x, prep)
    out = jax.block_until_ready(out)
    bal = jax.block_until_ready(bal)

    ref_out, ref_bal = reference_forward(x, params, rope_cache)
    np.testing.assert_allclose(np.asarray(out), np.asarray(ref_out), rtol=1e-4, atol=1e-4)
    np.testing.assert_allclose(np.asarray(bal), np.asarray(ref_bal), rtol=1e-4, atol=1e-5)

    print("KERNEL_OK")
</pallas_src>

<mosaic_0001>
module attributes {stable_mosaic.version = 11 : i64} {
  func.func @block_kernel(%arg0: memref<16x32xf32, #tpu.memory_space<vmem>>, %arg1: memref<32x256xf32, #tpu.memory_space<vmem>>, %arg2: memref<16x64xf32, #tpu.memory_space<vmem>>, %arg3: memref<16x64xf32, #tpu.memory_space<vmem>>, %arg4: memref<16x64xf32, #tpu.memory_space<vmem>>, %arg5: memref<16x16xf32, #tpu.memory_space<vmem>>, %arg6: memref<1x32xf32, #tpu.memory_space<vmem>>, %arg7: memref<32x516xf32, #tpu.memory_space<vmem>>, %arg8: memref<1x516xf32, #tpu.memory_space<vmem>>, %arg9: memref<256x32xf32, #tpu.memory_space<vmem>>, %arg10: memref<4x32xf32, #tpu.memory_space<vmem>>, %arg11: memref<4x256xf32, #tpu.memory_space<vmem>>, %arg12: memref<16x32xf32, #tpu.memory_space<vmem>>, %arg13: memref<1x1xf32, #tpu.memory_space<vmem>>) attributes {dimension_semantics = [], scalar_prefetch = 0 : i64, scratch_operands = 0 : i64, tpu.core_type = #tpu.core_type<tc>} {
    %c0 = arith.constant 0 : index
    %c0_0 = arith.constant 0 : index
    %0 = vector.load %arg0[%c0, %c0_0] : memref<16x32xf32, #tpu.memory_space<vmem>>, vector<16x32xf32>
    %1 = arith.mulf %0, %0 : vector<16x32xf32>
    %cst = arith.constant dense<0.000000e+00> : vector<16xf32>
    %2 = vector.multi_reduction <add>, %1, %cst [1] : vector<16x32xf32> to vector<16xf32>
    %3 = vector.shape_cast %2 : vector<16xf32> to vector<16x1xf32>
    %cst_1 = arith.constant 3.200000e+01 : f32
    %4 = vector.broadcast %cst_1 : f32 to vector<16x1xf32>
    %5 = arith.divf %3, %4 : vector<16x1xf32>
    %cst_2 = arith.constant 9.99999974E-6 : f32
    %6 = vector.broadcast %cst_2 : f32 to vector<16x1xf32>
    %7 = arith.addf %5, %6 : vector<16x1xf32>
    %8 = math.rsqrt %7 : vector<16x1xf32>
    %9 = vector.broadcast %8 : vector<16x1xf32> to vector<16x32xf32>
    %10 = arith.mulf %0, %9 : vector<16x32xf32>
    %c0_3 = arith.constant 0 : index
    %c0_4 = arith.constant 0 : index
    %11 = vector.load %arg1[%c0_3, %c0_4] : memref<32x256xf32, #tpu.memory_space<vmem>>, vector<32x256xf32>
    %cst_5 = arith.constant dense<0.000000e+00> : vector<16x256xf32>
    %12 = tpu.matmul %10, %11, %cst_5 {dimension_numbers = #tpu.dot_dimension_numbers<[1], [0], [0], [1], [0, 0, 1, 1], [], []>} : vector<16x32xf32>, vector<32x256xf32>, vector<16x256xf32> -> vector<16x256xf32>
    %13 = vector.extract_strided_slice %12 {offsets = [0, 0], sizes = [16, 64], strides = [1, 1]} : vector<16x256xf32> to vector<16x64xf32>
    %c0_6 = arith.constant 0 : index
    %c0_7 = arith.constant 0 : index
    %14 = vector.load %arg2[%c0_6, %c0_7] : memref<16x64xf32, #tpu.memory_space<vmem>>, vector<16x64xf32>
    %15 = arith.mulf %13, %14 : vector<16x64xf32>
    %16 = vector.extract_strided_slice %12 {offsets = [0, 64], sizes = [16, 64], strides = [1, 1]} : vector<16x256xf32> to vector<16x64xf32>
    %c0_8 = arith.constant 0 : index
    %c0_9 = arith.constant 0 : index
    %17 = vector.load %arg3[%c0_8, %c0_9] : memref<16x64xf32, #tpu.memory_space<vmem>>, vector<16x64xf32>
    %18 = arith.mulf %16, %17 : vector<16x64xf32>
    %19 = arith.addf %15, %18 : vector<16x64xf32>
    %c0_10 = arith.constant 0 : index
    %c0_11 = arith.constant 0 : index
    %20 = vector.load %arg4[%c0_10, %c0_11] : memref<16x64xf32, #tpu.memory_space<vmem>>, vector<16x64xf32>
    %21 = arith.addf %19, %20 : vector<16x64xf32>
    %c0_12 = arith.constant 0 : index
    %c0_13 = arith.constant 0 : index
    %22 = vector.load %arg5[%c0_12, %c0_13] : memref<16x16xf32, #tpu.memory_space<vmem>>, vector<16x16xf32>
    %c0_14 = arith.constant 0 : index
    %c0_15 = arith.constant 0 : index
    %23 = vector.load %arg6[%c0_14, %c0_15] : memref<1x32xf32, #tpu.memory_space<vmem>>, vector<1x32xf32>
    %24 = vector.broadcast %23 : vector<1x32xf32> to vector<16x32xf32>
    %25 = arith.addf %0, %24 : vector<16x32xf32>
    %26 = vector.extract_strided_slice %21 {offsets = [0, 0], sizes = [16, 8], strides = [1, 1]} : vector<16x64xf32> to vector<16x8xf32>
    %27 = vector.extract_strided_slice %21 {offsets = [0, 32], sizes = [16, 8], strides = [1, 1]} : vector<16x64xf32> to vector<16x8xf32>
    %cst_16 = arith.constant dense<0.000000e+00> : vector<16x16xf32>
    %28 = tpu.matmul %26, %27, %cst_16 {dimension_numbers = #tpu.dot_dimension_numbers<[1], [1], [0], [0], [0, 0, 1, 0], [], []>} : vector<16x8xf32>, vector<16x8xf32>, vector<16x16xf32> -> vector<16x16xf32>
    %29 = arith.addf %28, %22 : vector<16x16xf32>
    %cst_17 = arith.constant dense<0xFF800000> : vector<16xf32>
    %30 = vector.multi_reduction <maximumf>, %29, %cst_17 [1] : vector<16x16xf32> to vector<16xf32>
    %31 = vector.shape_cast %30 : vector<16xf32> to vector<16x1xf32>
    %32 = vector.broadcast %31 : vector<16x1xf32> to vector<16x16xf32>
    %33 = arith.subf %29, %32 : vector<16x16xf32>
    %34 = math.exp %33 : vector<16x16xf32>
    %cst_18 = arith.constant dense<0.000000e+00> : vector<16xf32>
    %35 = vector.multi_reduction <add>, %34, %cst_18 [1] : vector<16x16xf32> to vector<16xf32>
    %36 = vector.shape_cast %35 : vector<16xf32> to vector<16x1xf32>
    %37 = vector.broadcast %36 : vector<16x1xf32> to vector<16x16xf32>
    %38 = arith.divf %34, %37 : vector<16x16xf32>
    %39 = vector.extract_strided_slice %12 {offsets = [0, 128], sizes = [16, 32], strides = [1, 1]} : vector<16x256xf32> to vector<16x32xf32>
    %cst_19 = arith.constant dense<0.000000e+00> : vector<16x32xf32>
    %40 = tpu.matmul %38, %39, %cst_19 {dimension_numbers = #tpu.dot_dimension_numbers<[1], [0], [0], [1], [0, 0, 1, 1], [], []>} : vector<16x16xf32>, vector<16x32xf32>, vector<16x32xf32> -> vector<16x32xf32>
    %41 = arith.addf %25, %40 : vector<16x32xf32>
    %42 = vector.extract_strided_slice %21 {offsets = [0, 8], sizes = [16, 8], strides = [1, 1]} : vector<16x64xf32> to vector<16x8xf32>
    %43 = vector.extract_strided_slice %21 {offsets = [0, 40], sizes = [16, 8], strides = [1, 1]} : vector<16x64xf32> to vector<16x8xf32>
    %cst_20 = arith.constant dense<0.000000e+00> : vector<16x16xf32>
    %44 = tpu.matmul %42, %43, %cst_20 {dimension_numbers = #tpu.dot_dimension_numbers<[1], [1], [0], [0], [0, 0, 1, 0], [], []>} : vector<16x8xf32>, vector<16x8xf32>, vector<16x16xf32> -> vector<16x16xf32>
    %45 = arith.addf %44, %22 : vector<16x16xf32>
    %cst_21 = arith.constant dense<0xFF800000> : vector<16xf32>
    %46 = vector.multi_reduction <maximumf>, %45, %cst_21 [1] : vector<16x16xf32> to vector<16xf32>
    %47 = vector.shape_cast %46 : vector<16xf32> to vector<16x1xf32>
    %48 = vector.broadcast %47 : vector<16x1xf32> to vector<16x16xf32>
    %49 = arith.subf %45, %48 : vector<16x16xf32>
    %50 = math.exp %49 : vector<16x16xf32>
    %cst_22 = arith.constant dense<0.000000e+00> : vector<16xf32>
    %51 = vector.multi_reduction <add>, %50, %cst_22 [1] : vector<16x16xf32> to vector<16xf32>
    %52 = vector.shape_cast %51 : vector<16xf32> to vector<16x1xf32>
    %53 = vector.broadcast %52 : vector<16x1xf32> to vector<16x16xf32>
    %54 = arith.divf %50, %53 : vector<16x16xf32>
    %55 = vector.extract_strided_slice %12 {offsets = [0, 160], sizes = [16, 32], strides = [1, 1]} : vector<16x256xf32> to vector<16x32xf32>
    %cst_23 = arith.constant dense<0.000000e+00> : vector<16x32xf32>
    %56 = tpu.matmul %54, %55, %cst_23 {dimension_numbers = #tpu.dot_dimension_numbers<[1], [0], [0], [1], [0, 0, 1, 1], [], []>} : vector<16x16xf32>, vector<16x32xf32>, vector<16x32xf32> -> vector<16x32xf32>
    %57 = arith.addf %41, %56 : vector<16x32xf32>
    %58 = vector.extract_strided_slice %21 {offsets = [0, 16], sizes = [16, 8], strides = [1, 1]} : vector<16x64xf32> to vector<16x8xf32>
    %59 = vector.extract_strided_slice %21 {offsets = [0, 48], sizes = [16, 8], strides = [1, 1]} : vector<16x64xf32> to vector<16x8xf32>
    %cst_24 = arith.constant dense<0.000000e+00> : vector<16x16xf32>
    %60 = tpu.matmul %58, %59, %cst_24 {dimension_numbers = #tpu.dot_dimension_numbers<[1], [1], [0], [0], [0, 0, 1, 0], [], []>} : vector<16x8xf32>, vector<16x8xf32>, vector<16x16xf32> -> vector<16x16xf32>
    %61 = arith.addf %60, %22 : vector<16x16xf32>
    %cst_25 = arith.constant dense<0xFF800000> : vector<16xf32>
    %62 = vector.multi_reduction <maximumf>, %61, %cst_25 [1] : vector<16x16xf32> to vector<16xf32>
    %63 = vector.shape_cast %62 : vector<16xf32> to vector<16x1xf32>
    %64 = vector.broadcast %63 : vector<16x1xf32> to vector<16x16xf32>
    %65 = arith.subf %61, %64 : vector<16x16xf32>
    %66 = math.exp %65 : vector<16x16xf32>
    %cst_26 = arith.constant dense<0.000000e+00> : vector<16xf32>
    %67 = vector.multi_reduction <add>, %66, %cst_26 [1] : vector<16x16xf32> to vector<16xf32>
    %68 = vector.shape_cast %67 : vector<16xf32> to vector<16x1xf32>
    %69 = vector.broadcast %68 : vector<16x1xf32> to vector<16x16xf32>
    %70 = arith.divf %66, %69 : vector<16x16xf32>
    %71 = vector.extract_strided_slice %12 {offsets = [0, 192], sizes = [16, 32], strides = [1, 1]} : vector<16x256xf32> to vector<16x32xf32>
    %cst_27 = arith.constant dense<0.000000e+00> : vector<16x32xf32>
    %72 = tpu.matmul %70, %71, %cst_27 {dimension_numbers = #tpu.dot_dimension_numbers<[1], [0], [0], [1], [0, 0, 1, 1], [], []>} : vector<16x16xf32>, vector<16x32xf32>, vector<16x32xf32> -> vector<16x32xf32>
    %73 = arith.addf %57, %72 : vector<16x32xf32>
    %74 = vector.extract_strided_slice %21 {offsets = [0, 24], sizes = [16, 8], strides = [1, 1]} : vector<16x64xf32> to vector<16x8xf32>
    %75 = vector.extract_strided_slice %21 {offsets = [0, 56], sizes = [16, 8], strides = [1, 1]} : vector<16x64xf32> to vector<16x8xf32>
    %cst_28 = arith.constant dense<0.000000e+00> : vector<16x16xf32>
    %76 = tpu.matmul %74, %75, %cst_28 {dimension_numbers = #tpu.dot_dimension_numbers<[1], [1], [0], [0], [0, 0, 1, 0], [], []>} : vector<16x8xf32>, vector<16x8xf32>, vector<16x16xf32> -> vector<16x16xf32>
    %77 = arith.addf %76, %22 : vector<16x16xf32>
    %cst_29 = arith.constant dense<0xFF800000> : vector<16xf32>
    %78 = vector.multi_reduction <maximumf>, %77, %cst_29 [1] : vector<16x16xf32> to vector<16xf32>
    %79 = vector.shape_cast %78 : vector<16xf32> to vector<16x1xf32>
    %80 = vector.broadcast %79 : vector<16x1xf32> to vector<16x16xf32>
    %81 = arith.subf %77, %80 : vector<16x16xf32>
    %82 = math.exp %81 : vector<16x16xf32>
    %cst_30 = arith.constant dense<0.000000e+00> : vector<16xf32>
    %83 = vector.multi_reduction <add>, %82, %cst_30 [1] : vector<16x16xf32> to vector<16xf32>
    %84 = vector.shape_cast %83 : vector<16xf32> to vector<16x1xf32>
    %85 = vector.broadcast %84 : vector<16x1xf32> to vector<16x16xf32>
    %86 = arith.divf %82, %85 : vector<16x16xf32>
    %87 = vector.extract_strided_slice %12 {offsets = [0, 224], sizes = [16, 32], strides = [1, 1]} : vector<16x256xf32> to vector<16x32xf32>
    %cst_31 = arith.constant dense<0.000000e+00> : vector<16x32xf32>
    %88 = tpu.matmul %86, %87, %cst_31 {dimension_numbers = #tpu.dot_dimension_numbers<[1], [0], [0], [1], [0, 0, 1, 1], [], []>} : vector<16x16xf32>, vector<16x32xf32>, vector<16x32xf32> -> vector<16x32xf32>
    %89 = arith.addf %73, %88 : vector<16x32xf32>
    %90 = arith.mulf %89, %89 : vector<16x32xf32>
    %cst_32 = arith.constant dense<0.000000e+00> : vector<16xf32>
    %91 = vector.multi_reduction <add>, %90, %cst_32 [1] : vector<16x32xf32> to vector<16xf32>
    %92 = vector.shape_cast %91 : vector<16xf32> to vector<16x1xf32>
    %cst_33 = arith.constant 3.200000e+01 : f32
    %93 = vector.broadcast %cst_33 : f32 to vector<16x1xf32>
    %94 = arith.divf %92, %93 : vector<16x1xf32>
    %cst_34 = arith.constant 9.99999974E-6 : f32
    %95 = vector.broadcast %cst_34 : f32 to vector<16x1xf32>
    %96 = arith.addf %94, %95 : vector<16x1xf32>
    %97 = math.rsqrt %96 : vector<16x1xf32>
    %98 = vector.broadcast %97 : vector<16x1xf32> to vector<16x32xf32>
    %99 = arith.mulf %89, %98 : vector<16x32xf32>
    %c0_35 = arith.constant 0 : index
    %c0_36 = arith.constant 0 : index
    %100 = vector.load %arg7[%c0_35, %c0_36] : memref<32x516xf32, #tpu.memory_space<vmem>>, vector<32x516xf32>
    %cst_37 = arith.constant dense<0.000000e+00> : vector<16x516xf32>
    %101 = tpu.matmul %99, %100, %cst_37 {dimension_numbers = #tpu.dot_dimension_numbers<[1], [0], [0], [1], [0, 0, 1, 1], [], []>} : vector<16x32xf32>, vector<32x516xf32>, vector<16x516xf32> -> vector<16x516xf32>
    %c0_38 = arith.constant 0 : index
    %c0_39 = arith.constant 0 : index
    %102 = vector.load %arg8[%c0_38, %c0_39] : memref<1x516xf32, #tpu.memory_space<vmem>>, vector<1x516xf32>
    %103 = vector.broadcast %102 : vector<1x516xf32> to vector<16x516xf32>
    %104 = arith.addf %101, %103 : vector<16x516xf32>
    %105 = vector.extract_strided_slice %104 {offsets = [0, 0], sizes = [16, 256], strides = [1, 1]} : vector<16x516xf32> to vector<16x256xf32>
    %106 = vector.extract_strided_slice %104 {offsets = [0, 256], sizes = [16, 256], strides = [1, 1]} : vector<16x516xf32> to vector<16x256xf32>
    %107 = vector.extract_strided_slice %104 {offsets = [0, 512], sizes = [16, 4], strides = [1, 1]} : vector<16x516xf32> to vector<16x4xf32>
    %cst_40 = arith.constant dense<0xFF800000> : vector<16xf32>
    %108 = vector.multi_reduction <maximumf>, %107, %cst_40 [1] : vector<16x4xf32> to vector<16xf32>
    %109 = vector.shape_cast %108 : vector<16xf32> to vector<16x1xf32>
    %110 = vector.broadcast %109 : vector<16x1xf32> to vector<16x4xf32>
    %111 = arith.subf %107, %110 : vector<16x4xf32>
    %112 = math.exp %111 : vector<16x4xf32>
    %cst_41 = arith.constant dense<0.000000e+00> : vector<16xf32>
    %113 = vector.multi_reduction <add>, %112, %cst_41 [1] : vector<16x4xf32> to vector<16xf32>
    %114 = vector.shape_cast %113 : vector<16xf32> to vector<16x1xf32>
    %115 = vector.broadcast %114 : vector<16x1xf32> to vector<16x4xf32>
    %116 = arith.divf %112, %115 : vector<16x4xf32>
    %117 = tpu.iota {dimensions = array<i32: 1>} : vector<16x4xi32>
    %c1_i32 = arith.constant 1 : i32
    %118 = vector.broadcast %c1_i32 : i32 to vector<16x4xi32>
    %119 = arith.cmpi slt, %117, %118 : vector<16x4xi32>
    %cst_42 = arith.constant 0xFF800000 : f32
    %120 = vector.broadcast %cst_42 : f32 to vector<16x4xf32>
    %121 = arith.select %119, %120, %116 : vector<16x4xi1>, vector<16x4xf32>
    %cst_43 = arith.constant 0.000000e+00 : f32
    %122 = vector.broadcast %cst_43 : f32 to vector<16x4xf32>
    %cst_44 = arith.constant dense<0xFF800000> : vector<16xf32>
    %123 = vector.multi_reduction <maximumf>, %121, %cst_44 [1] : vector<16x4xf32> to vector<16xf32>
    %124 = vector.shape_cast %123 : vector<16xf32> to vector<16x1xf32>
    %125 = vector.broadcast %124 : vector<16x1xf32> to vector<16x4xf32>
    %126 = arith.cmpf oeq, %121, %125 : vector<16x4xf32>
    %c4_i32 = arith.constant 4 : i32
    %127 = vector.broadcast %c4_i32 : i32 to vector<16x4xi32>
    %128 = arith.select %126, %117, %127 : vector<16x4xi1>, vector<16x4xi32>
    %cst_45 = arith.constant dense<2147483647> : vector<16xi32>
    %129 = vector.multi_reduction <minsi>, %128, %cst_45 [1] : vector<16x4xi32> to vector<16xi32>
    %130 = vector.shape_cast %129 : vector<16xi32> to vector<16x1xi32>
    %131 = vector.broadcast %130 : vector<16x1xi32> to vector<16x4xi32>
    %132 = arith.cmpi eq, %117, %131 : vector<16x4xi32>
    %133 = arith.select %132, %116, %122 : vector<16x4xi1>, vector<16x4xf32>
    %cst_46 = arith.constant 0xFF800000 : f32
    %134 = vector.broadcast %cst_46 : f32 to vector<16x4xf32>
    %135 = arith.select %132, %134, %121 : vector<16x4xi1>, vector<16x4xf32>
    %cst_47 = arith.constant dense<0xFF800000> : vector<16xf32>
    %136 = vector.multi_reduction <maximumf>, %135, %cst_47 [1] : vector<16x4xf32> to vector<16xf32>
    %137 = vector.shape_cast %136 : vector<16xf32> to vector<16x1xf32>
    %138 = vector.broadcast %137 : vector<16x1xf32> to vector<16x4xf32>
    %139 = arith.cmpf oeq, %135, %138 : vector<16x4xf32>
    %c4_i32_48 = arith.constant 4 : i32
    %140 = vector.broadcast %c4_i32_48 : i32 to vector<16x4xi32>
    %141 = arith.select %139, %117, %140 : vector<16x4xi1>, vector<16x4xi32>
    %cst_49 = arith.constant dense<2147483647> : vector<16xi32>
    %142 = vector.multi_reduction <minsi>, %141, %cst_49 [1] : vector<16x4xi32> to vector<16xi32>
    %143 = vector.shape_cast %142 : vector<16xi32> to vector<16x1xi32>
    %144 = vector.broadcast %143 : vector<16x1xi32> to vector<16x4xi32>
    %145 = arith.cmpi eq, %117, %144 : vector<16x4xi32>
    %146 = arith.select %145, %116, %133 : vector<16x4xi1>, vector<16x4xf32>
    %147 = arith.select %119, %116, %146 : vector<16x4xi1>, vector<16x4xf32>
    %cst_50 = arith.constant 1.000000e+00 : f32
    %148 = vector.broadcast %cst_50 : f32 to vector<16x4xf32>
    %149 = arith.mulf %147, %148 : vector<16x4xf32>
    %cst_51 = arith.constant dense<0.000000e+00> : vector<16xf32>
    %150 = vector.multi_reduction <add>, %149, %cst_51 [1] : vector<16x4xf32> to vector<16xf32>
    %151 = vector.shape_cast %150 : vector<16xf32> to vector<16x1xf32>
    %cst_52 = arith.constant 9.99999993E-9 : f32
    %152 = vector.broadcast %cst_52 : f32 to vector<16x1xf32>
    %153 = arith.addf %151, %152 : vector<16x1xf32>
    %154 = vector.broadcast %153 : vector<16x1xf32> to vector<16x4xf32>
    %155 = arith.divf %149, %154 : vector<16x4xf32>
    %156 = arith.negf %106 : vector<16x256xf32>
    %157 = math.exp %156 : vector<16x256xf32>
    %cst_53 = arith.constant 1.000000e+00 : f32
    %158 = vector.broadcast %cst_53 : f32 to vector<16x256xf32>
    %159 = arith.addf %158, %157 : vector<16x256xf32>
    %160 = arith.divf %158, %159 : vector<16x256xf32>
    %161 = arith.mulf %106, %160 : vector<16x256xf32>
    %162 = arith.mulf %105, %161 : vector<16x256xf32>
    %c0_54 = arith.constant 0 : index
    %c0_55 = arith.constant 0 : index
    %163 = vector.load %arg11[%c0_54, %c0_55] : memref<4x256xf32, #tpu.memory_space<vmem>>, vector<4x256xf32>
    %cst_56 = arith.constant dense<0.000000e+00> : vector<16x256xf32>
    %164 = tpu.matmul %155, %163, %cst_56 {dimension_numbers = #tpu.dot_dimension_numbers<[1], [0], [0], [1], [0, 0, 1, 1], [], []>} : vector<16x4xf32>, vector<4x256xf32>, vector<16x256xf32> -> vector<16x256xf32>
    %165 = arith.mulf %162, %164 : vector<16x256xf32>
    %c0_57 = arith.constant 0 : index
    %c0_58 = arith.constant 0 : index
    %166 = vector.load %arg9[%c0_57, %c0_58] : memref<256x32xf32, #tpu.memory_space<vmem>>, vector<256x32xf32>
    %cst_59 = arith.constant dense<0.000000e+00> : vector<16x32xf32>
    %167 = tpu.matmul %165, %166, %cst_59 {dimension_numbers = #tpu.dot_dimension_numbers<[1], [0], [0], [1], [0, 0, 1, 1], [], []>} : vector<16x256xf32>, vector<256x32xf32>, vector<16x32xf32> -> vector<16x32xf32>
    %c0_60 = arith.constant 0 : index
    %c0_61 = arith.constant 0 : index
    %168 = vector.load %arg10[%c0_60, %c0_61] : memref<4x32xf32, #tpu.memory_space<vmem>>, vector<4x32xf32>
    %cst_62 = arith.constant dense<0.000000e+00> : vector<16x32xf32>
    %169 = tpu.matmul %155, %168, %cst_62 {dimension_numbers = #tpu.dot_dimension_numbers<[1], [0], [0], [1], [0, 0, 1, 1], [], []>} : vector<16x4xf32>, vector<4x32xf32>, vector<16x32xf32> -> vector<16x32xf32>
    %170 = arith.addf %167, %169 : vector<16x32xf32>
    %171 = arith.addf %89, %170 : vector<16x32xf32>
    %c0_63 = arith.constant 0 : index
    %c0_64 = arith.constant 0 : index
    %172 = vector.load %arg12[%c0_63, %c0_64] : memref<16x32xf32, #tpu.memory_space<vmem>>, vector<16x32xf32>
    tpu.vector_store %arg12[%c0_63, %c0_64], %171 {strides = array<i32>} : memref<16x32xf32, #tpu.memory_space<vmem>>, vector<16x32xf32>,
    %cst_65 = arith.constant 0.000000e+00 : f32
    %173 = vector.broadcast %cst_65 : f32 to vector<16x4xf32>
    %174 = arith.cmpf ogt, %149, %173 : vector<16x4xf32>
    %175 = arith.extui %174 : vector<16x4xi1> to vector<16x4xi32>
    %176 = arith.sitofp %175 : vector<16x4xi32> to vector<16x4xf32>
    %cst_66 = arith.constant dense<0.000000e+00> : vector<4xf32>
    %177 = vector.multi_reduction <add>, %176, %cst_66 [0] : vector<16x4xf32> to vector<4xf32>
    %178 = vector.shape_cast %177 : vector<4xf32> to vector<1x4xf32>
    %cst_67 = arith.constant dense<0.000000e+00> : vector<4xf32>
    %179 = vector.multi_reduction <add>, %116, %cst_67 [0] : vector<16x4xf32> to vector<4xf32>
    %180 = vector.shape_cast %179 : vector<4xf32> to vector<1x4xf32>
    %cst_68 = arith.constant 0.0833333358 : f32
    %181 = vector.broadcast %cst_68 : f32 to vector<1x4xf32>
    %182 = arith.mulf %181, %178 : vector<1x4xf32>
    %cst_69 = arith.constant 1.600000e+01 : f32
    %183 = vector.broadcast %cst_69 : f32 to vector<1x4xf32>
    %184 = arith.divf %180, %183 : vector<1x4xf32>
    %185 = arith.mulf %182, %184 : vector<1x4xf32>
    %cst_70 = arith.constant dense<0.000000e+00> : vector<1xf32>
    %186 = vector.multi_reduction <add>, %185, %cst_70 [1] : vector<1x4xf32> to vector<1xf32>
    %187 = vector.shape_cast %186 : vector<1xf32> to vector<1x1xf32>
    %c0_71 = arith.constant 0 : index
    %c0_72 = arith.constant 0 : index
    %188 = vector.load %arg13[%c0_71, %c0_72] : memref<1x1xf32, #tpu.memory_space<vmem>>, vector<1x1xf32>
    tpu.vector_store %arg13[%c0_71, %c0_72], %187 {strides = array<i32>} : memref<1x1xf32, #tpu.memory_space<vmem>>, vector<1x1xf32>,
    return
  }
}

</mosaic_0001>

<bundles_post_ra>
// kernel: block_forward.1
= control target key start
LH: loop header
LB: loop body
LE: loop exit
PB: predicated region body
PF: predicated region fallthrough
CT: control target
= control target key end

     0   :  { %19 = vsyncpa [#allocation3], 0  ;;  %vm49_vm0 = vcmask 261120   ;;  %s2677_s0 = inlined_call_operand.vmem [shape: f32[16,32], index: 0, kind: input, shape index: {}]   ;;  %s2678_s1 = inlined_call_operand.vmem [shape: f32[32,256], index: 1, kind: input, shape index: {}]   ;;  %s2679_s2 = inlined_call_operand.vmem [shape: f32[16,64], index: 2, kind: input, shape index: {}]   ;;  %s2680_s3 = inlined_call_operand.vmem [shape: f32[16,64], index: 3, kind: input, shape index: {}]   ;;  %s2681_s4 = inlined_call_operand.vmem [shape: f32[16,64], index: 4, kind: input, shape index: {}]   ;;  %s2682_s5 = inlined_call_operand.vmem [shape: f32[16,16], index: 5, kind: input, shape index: {}]   ;;  %s2683_s6 = inlined_call_operand.vmem [shape: f32[1,32], index: 6, kind: input, shape index: {}]   ;;  %s2684_s7 = inlined_call_operand.vmem [shape: f32[32,516], index: 7, kind: input, shape index: {}]   ;;  %s2685_s8 = inlined_call_operand.vmem [shape: f32[1,516], index: 8, kind: input, shape index: {}]   ;;  %s2686_s9 = inlined_call_operand.vmem [shape: f32[256,32], index: 9, kind: input, shape index: {}]   ;;  %s2687_s10 = inlined_call_operand.vmem [shape: f32[4,32], index: 10, kind: input, shape index: {}]   ;;  %s2688_s11 = inlined_call_operand.vmem [shape: f32[4,256], index: 11, kind: input, shape index: {}]   ;;  %s2689_s12 = inlined_call_operand.hbm [shape: f32[16,32], index: 12, kind: output, shape index: {0}]   ;;  %s2690_s13 = inlined_call_operand.hbm [shape: f32[1,1], index: 13, kind: output, shape index: {1}]  }
   0x1   :  { %v2222_v0 = vld [vmem:[%s2677_s0] sm:$0xff]  ;;  %v2227_v1 = vld [vmem:[%s2677_s0 + $0x8] sm:$0xff] }
   0x2   :  { %20 = vsyncpa [#allocation5], 0  ;;  %v47_v2 = vmul.f32 %v2222_v0, %v2222_v0  ;;  %v48_v3 = vmul.f32 %v2227_v1, %v2227_v1  ;;  %v72_v6 = vld [vmem:[%s2678_s1 + $0x38] sm:$0xff]  ;;  %v71_v7 = vld [vmem:[%s2678_s1 + $0x30] sm:$0xff]  ;;  %v2135_v10 = vmov 0.0   ;;  %s2136_s29 = smov 64  }
   0x3   :  { %v70_v8 = vld [vmem:[%s2678_s1 + $0x28] sm:$0xff]  ;;  %103 = vmatprep.subr.mxu0 %v72_v6  ;;  %v69_v9 = vld [vmem:[%s2678_s1 + $0x20] sm:$0xff]  ;;  %143 = vmatprep.mubr.f32.mxu0 %v2135_v10  ;;  %v68_v11 = vld [vmem:[%s2678_s1 + $0x18] sm:$0xff]  ;;  %vm203_vm1 = vcmask 64512   ;;  %s2138_s20 = smov 96   ;;  %s2140_s21 = smov 88  }
   0x4   :  { %v50_v4 = vsel %vm49_vm0, %v47_v2, 0.0  ;;  %v53_v5 = vsel %vm49_vm0, %v48_v3, 0.0  ;;  %104 = vmatpush1.msra.mxu0 %v71_v7  ;;  %v67_v12 = vld [vmem:[%s2678_s1 + $0x10] sm:$0xff]  ;;  %v66_v13 = vld [vmem:[%s2678_s1 + $0x8] sm:$0xff]  ;;  %v65_v14 = vld [vmem:[%s2678_s1] sm:$0xff]  ;;  %s2141_s22 = smov 120  }
   0x5   :  { %51 = vadd.xlane.f32.xlu0 %v50_v4  ;;  %105 = vmatprep.subr.mxu0 %v70_v8  ;;  %v161_v15 = vld [vmem:[%s2680_s3 + $0x8] sm:$0xff]  ;;  %v160_v16 = vld [vmem:[%s2680_s3] sm:$0xff]  ;;  %vm287_vm2 = vcmask 130048   ;;  %s2143_s27 = smov 104   ;;  %vm1299_vm3 = vcmask 31744   ;;  %s2145_s1 = smov [#allocation4]  }
   0x6   :  { %106 = vmatpush1.msra.mxu0 %v69_v9  ;;  %166 = vrot.lane.b32.xlu1 %v161_v15, %s2136_s29  ;;  %v156_v35 = vld [vmem:[%s2679_s2] sm:$0xff]  ;;  %v157_v37 = vld [vmem:[%s2679_s2 + $0x8] sm:$0xff]  ;;  %s2137_s2 = smov 80   ;;  %s1799_s3 = sshll.u32 %s2145_s1, 4  ;;  %s1800_s3 = int_to_ptr.vmem [resolvable:$true] %s1799_s3 }
   0x7   :  { %107 = vmatprep.subr.mxu0 %v68_v11  ;;  %v182_v38 = vld [vmem:[%s2681_s4] sm:$0xff]  ;;  %v183_v43 = vld [vmem:[%s2681_s4 + $0x8] sm:$0xff]  ;;  %s2139_s4 = smov 112   ;;  %s2095_s0 = scalar_lea.vmem %s1800_s3, 32 }
   0x8   :  { %108 = vmatpush1.msra.mxu0 %v67_v12  ;;  %v2334_v57 = vld [vmem:[%s2682_s5 + $0x8] sm:$0xff]  ;;  %v2339_v59 = vld [vmem:[%s2682_s5] sm:$0xff]  ;;  %s2142_s5 = smov 72   ;;  %p2096_p1 = scmp.lt.s32.totalorder %s1800_s3, %s1800_s3 }
   0x9   :  { %54 = vadd.xlane.f32.xlu0 %v53_v5  ;;  %109 = vmatprep.subr.mxu0 %v66_v13 }
   0xa   :  { %110 = vmatpush1.msra.mxu0 %v65_v14  ;;  %164 = vrot.lane.b32.xlu1 %v160_v16, %s2136_s29 }
  0x78   :  { %v167_v27 = vpop.permute.xlu1 %166 }
  0x7c   :  { %v165_v28 = vpop.permute.xlu1 %164 }
  0x8e   :  { %v52_v17 = vpop.xlane.xlu0 %51 }
  0x8f   :  { %v57_v18 = vmul.f32 0.03125, %v52_v17 }
  0x91   :  { %v59_v19 = vadd.f32 1e-05, %v57_v18 }
  0x92   :  { %v55_v20 = vpop.xlane.xlu0 %54 }
  0x93   :  { %2023 = vrsqrt.f32 %v59_v19  ;;  %v58_v21 = vmul.f32 0.03125, %v55_v20 }
  0x95   :  { %v60_v22 = vadd.f32 1e-05, %v58_v21 }
  0x97   :  { %2025 = vrsqrt.f32 %v60_v22 }
  0xa0   :  { %v2024_v23 = vpop.eup %2023 }
  0xa1   :  { %v63_v24 = vmul.f32 %v2024_v23, %v2222_v0 }
  0xa3   :  { %1811 = vmatmul.mubr.msk.f32.vlgmr.msra.gmra.mxu0 %vm49_vm0, %v63_v24 }
  0xa4   :  { %v2026_v25 = vpop.eup %2025  ;;  %149 = vmatprep.mubr.f32.mxu0 %v2135_v10 }
  0xa5   :  { %v64_v26 = vmul.f32 %v2026_v25, %v2227_v1 }
  0xa7   :  { %1812 = vmatmul.mubr.msk.f32.gmra.mxu0 %vm49_vm0, %v64_v26 }
 0x163   :  { %v145_v29 = vpop.f32.mrf.mxu0 }
 0x164   :  { %v170_v30 = vmul.f32 %v165_v28, %v145_v29  ;;  %v158_v36 = vmul.f32 %v156_v35, %v145_v29 }
 0x165   :  { %v2273_v31 = vpop.f32.mrf.mxu0 }
 0x166   :  { %174 = vrot.lane.b32.xlu1 %v170_v30, %s2136_s29 }
 0x167   :  { %v151_v32 = vpop.f32.mrf.mxu0 }
 0x168   :  { %v171_v33 = vmul.f32 %v167_v27, %v151_v32  ;;  %v159_v41 = vmul.f32 %v157_v37, %v151_v32 }
 0x169   :  { %v2276_v34 = vpop.f32.mrf.mxu0 }
 0x16a   :  { %176 = vrot.lane.b32.xlu0 %v171_v33, %s2136_s29  ;;  %1943 = vmatprep.subr.mxu1 %v2276_v34 }
 0x16b   :  { %1944 = vmatpush3.msra.mxu1 %v2276_v34 }
 0x16c   :  { %1945 = vmatprep.subr.mxu1 %v2273_v31 }
 0x16d   :  { %1946 = vmatpush3.msra.mxu1 %v2273_v31 }
 0x1d8   :  { %v175_v39 = vpop.permute.xlu1 %174 }
 0x1d9   :  { %v180_v40 = vadd.f32 %v175_v39, %v158_v36 }
 0x1db   :  { %v2292_v42 = vadd.f32 %v182_v38, %v180_v40 }
 0x1dc   :  { %v177_v44 = vpop.permute.xlu0 %176 }
 0x1dd   :  { %v181_v45 = vadd.f32 %v177_v44, %v159_v41  ;;  %1940 = vmatprep.mubr.msk.f32.mxu0 %vm203_vm1, %v2292_v42 }
 0x1df   :  { %v2299_v46 = vadd.f32 %v183_v43, %v181_v45 }
 0x1e1   :  { %603 = vrot.lane.b32.xlu0 %v2299_v46, %s2137_s2  ;;  %201 = vrot.lane.b32.xlu1 %v2299_v46, %s2138_s20 }
 0x1e5   :  { %601 = vrot.lane.b32.xlu0 %v2292_v42, %s2137_s2  ;;  %199 = vrot.lane.b32.xlu1 %v2292_v42, %s2138_s20 }
 0x1e9   :  { %599 = vrot.lane.b32.xlu0 %v2299_v46, %s2139_s4  ;;  %399 = vrot.lane.b32.xlu1 %v2299_v46, %s2140_s21 }
 0x1ed   :  { %397 = vrot.lane.b32.xlu1 %v2292_v42, %s2140_s21 }
 0x1f1   :  { %393 = vrot.lane.b32.xlu1 %v2292_v42, %s2141_s22 }
 0x1f5   :  { %395 = vrot.lane.b32.xlu1 %v2299_v46, %s2141_s22 }
 0x1f9   :  { %597 = vrot.lane.b32.xlu1 %v2292_v42, %s2139_s4 }
 0x253   :  { %v202_v47 = vpop.permute.xlu1 %201  ;;  %v604_v51 = vpop.permute.xlu0 %603 }
 0x254   :  { %1936 = vmatprep.subr.msk.mxu0 %vm203_vm1, %v202_v47 }
 0x255   :  { %1937 = vmatpush3.xpose.msk.msra.mxu0 %vm203_vm1, %v202_v47 }
 0x257   :  { %v200_v48 = vpop.permute.xlu1 %199  ;;  %v602_v54 = vpop.permute.xlu0 %601 }
 0x258   :  { %1938 = vmatprep.subr.msk.mxu0 %vm203_vm1, %v200_v48 }
 0x259   :  { %1939 = vmatpush3.xpose.msk.msra.mxu0 %vm203_vm1, %v200_v48 }
 0x25b   :  { %v400_v49 = vpop.permute.xlu1 %399  ;;  %v600_v56 = vpop.permute.xlu0 %599 }
 0x25c   :  { %1941 = vmatmul.mubr.msk.f32.vlgmr.msra.gmra.mxu0 %vm203_vm1, %v2299_v46  ;;  %1950 = vmatprep.subr.msk.mxu0 %vm203_vm1, %v400_v49 }
 0x25d   :  { %1951 = vmatpush3.xpose.msk.msra.mxu0 %vm203_vm1, %v400_v49 }
 0x25f   :  { %v398_v50 = vpop.permute.xlu1 %397 }
 0x260   :  { %1952 = vmatprep.subr.msk.mxu0 %vm203_vm1, %v398_v50 }
 0x261   :  { %1953 = vmatpush3.xpose.msk.msra.mxu0 %vm203_vm1, %v398_v50 }
 0x262   :  { %1964 = vmatprep.subr.msk.mxu0 %vm203_vm1, %v604_v51 }
 0x263   :  { %v394_v52 = vpop.permute.xlu1 %393 }
 0x264   :  { %1954 = vmatprep.mubr.msk.f32.mxu0 %vm203_vm1, %v394_v52 }
 0x267   :  { %v396_v53 = vpop.permute.xlu1 %395 }
 0x268   :  { %1955 = vmatmul.mubr.msk.f32.vlgmr.msra.gmra.mxu0 %vm203_vm1, %v396_v53 }
 0x269   :  { %1965 = vmatpush3.xpose.msk.msra.mxu0 %vm203_vm1, %v604_v51 }
 0x26a   :  { %1966 = vmatprep.subr.msk.mxu0 %vm203_vm1, %v602_v54 }
 0x26b   :  { %v598_v55 = vpop.permute.xlu1 %597 }
 0x26c   :  { %1968 = vmatprep.mubr.msk.f32.mxu0 %vm203_vm1, %v598_v55 }
 0x26d   :  { %1967 = vmatpush3.xpose.msk.msra.mxu0 %vm203_vm1, %v602_v54 }
 0x270   :  { %1969 = vmatmul.mubr.msk.f32.vlgmr.msra.gmra.mxu0 %vm203_vm1, %v600_v56 }
 0x31c   :  { %v1942_v58 = vpop.f32.mrf.mxu0 }
 0x31d   :  { %v284_v60 = vadd.f32 %v1942_v58, %v2334_v57 }
 0x31e   :  { %v278_v61 = vpop.f32.mrf.mxu0 }
 0x31f   :  { %v279_v62 = vadd.f32 %v278_v61, %v2339_v59  ;;  %v291_v63 = vsel %vm287_vm2, %v284_v60, -inf }
 0x320   :  { %292 = vmax.xlane.f32.xlu0 %v291_v63 }
 0x321   :  { %v288_v2 = vsel %vm287_vm2, %v279_v62, -inf }
 0x322   :  { %289 = vmax.xlane.f32.xlu1 %v288_v2 }
 0x328   :  { %v1956_v3 = vpop.f32.mrf.mxu0 }
 0x329   :  { %v481_v4 = vadd.f32 %v1956_v3, %v2334_v57 }
 0x32a   :  { %v475_v5 = vpop.f32.mrf.mxu0 }
 0x32b   :  { %v476_v6 = vadd.f32 %v475_v5, %v2339_v59  ;;  %v487_v7 = vsel %vm287_vm2, %v481_v4, -inf }
 0x32c   :  { %488 = vmax.xlane.f32.xlu1 %v487_v7 }
 0x32d   :  { %v484_v8 = vsel %vm287_vm2, %v476_v6, -inf }
 0x32e   :  { %485 = vmax.xlane.f32.xlu0 %v484_v8 }
 0x330   :  { %v1970_v9 = vpop.f32.mrf.mxu0 }
 0x331   :  { %v685_v11 = vadd.f32 %v1970_v9, %v2334_v57 }
 0x332   :  { %v679_v12 = vpop.f32.mrf.mxu0 }
 0x333   :  { %v680_v13 = vadd.f32 %v679_v12, %v2339_v59  ;;  %v691_v14 = vsel %vm287_vm2, %v685_v11, -inf }
 0x334   :  { %692 = vmax.xlane.f32.xlu1 %v691_v14 }
 0x335   :  { %v688_v15 = vsel %vm287_vm2, %v680_v13, -inf }
 0x336   :  { %689 = vmax.xlane.f32.xlu0 %v688_v15  ;;  %v1813_v15 = vld [vmem:[%s2683_s6] ss:$0 sm:$0xff]  ;;  %s2144_s6 = smov 32  }
 0x345   :  { %508 = vrot.lane.b32.xlu1 %v2273_v31, %s2138_s20 }
 0x349   :  { %712 = vrot.lane.b32.xlu1 %v2276_v34, %s2136_s29 }
 0x34c   :  { %510 = vrot.lane.b32.xlu0 %v2276_v34, %s2138_s20 }
 0x3a9   :  { %v293_v16 = vpop.xlane.xlu0 %292 }
 0x3aa   :  { %v295_v17 = vsub.f32 %v284_v60, %v293_v16 }
 0x3ab   :  { %v290_v18 = vpop.xlane.xlu1 %289 }
 0x3ac   :  { %v298_v19 = vmul.f32 1.442695, %v295_v17  ;;  %v294_v20 = vsub.f32 %v279_v62, %v290_v18  ;;  %v196_v17 = vadd.f32 %v1813_v15, %v2227_v1  ;;  %v195_v18 = vadd.f32 %v1813_v15, %v2222_v0 }
 0x3ae   :  { %2027 = vpow2.f32 %v298_v19  ;;  %v296_v21 = vmul.f32 1.442695, %v294_v20 }
 0x3b0   :  { %2029 = vpow2.f32 %v296_v21 }
 0x3b5   :  { %v489_v22 = vpop.xlane.xlu1 %488 }
 0x3b6   :  { %v491_v23 = vsub.f32 %v481_v4, %v489_v22 }
 0x3b7   :  { %v486_v24 = vpop.xlane.xlu0 %485 }
 0x3b8   :  { %v494_v25 = vmul.f32 1.442695, %v491_v23  ;;  %v490_v26 = vsub.f32 %v476_v6, %v486_v24 }
 0x3ba   :  { %2031 = vpow2.f32 %v494_v25  ;;  %v492_v27 = vmul.f32 1.442695, %v490_v26 }
 0x3bb   :  { %v2028_v28 = vpop.eup %2027 }
 0x3bc   :  { %2033 = vpow2.f32 %v492_v27  ;;  %v303_v29 = vsel %vm287_vm2, %v2028_v28, 0.0 }
 0x3bd   :  { %v2030_v30 = vpop.eup %2029  ;;  %v693_v32 = vpop.xlane.xlu1 %692  ;;  %304 = vadd.xlane.f32.xlu1 %v303_v29 }
 0x3be   :  { %v695_v33 = vsub.f32 %v685_v11, %v693_v32  ;;  %v300_v35 = vsel %vm287_vm2, %v2030_v30, 0.0 }
 0x3bf   :  { %v690_v36 = vpop.xlane.xlu0 %689  ;;  %301 = vadd.xlane.f32.xlu0 %v300_v35 }
 0x3c0   :  { %v698_v37 = vmul.f32 1.442695, %v695_v33  ;;  %v694_v38 = vsub.f32 %v680_v13, %v690_v36 }
 0x3c1   :  { %v509_v51 = vpop.permute.xlu1 %508 }
 0x3c2   :  { %2035 = vpow2.f32 %v698_v37  ;;  %v696_v39 = vmul.f32 1.442695, %v694_v38 }
 0x3c3   :  { %v511_v40 = vpop.permute.xlu0 %510 }
 0x3c4   :  { %2037 = vpow2.f32 %v696_v39  ;;  %1957 = vmatprep.subr.mxu1 %v511_v40 }
 0x3c5   :  { %v713_v52 = vpop.permute.xlu1 %712 }
 0x3c7   :  { %v2032_v41 = vpop.eup %2031 }
 0x3c8   :  { %v499_v43 = vsel %vm287_vm2, %v2032_v41, 0.0 }
 0x3c9   :  { %v2034_v44 = vpop.eup %2033  ;;  %500 = vadd.xlane.f32.xlu1 %v499_v43 }
 0x3ca   :  { %v496_v45 = vsel %vm287_vm2, %v2034_v44, 0.0 }
 0x3cb   :  { %497 = vadd.xlane.f32.xlu0 %v496_v45 }
 0x3cf   :  { %v2036_v47 = vpop.eup %2035 }
 0x3d0   :  { %v703_v48 = vsel %vm287_vm2, %v2036_v47, 0.0 }
 0x3d1   :  { %v2038_v49 = vpop.eup %2037  ;;  %704 = vadd.xlane.f32.xlu1 %v703_v48 }
 0x3d2   :  { %v700_v50 = vsel %vm287_vm2, %v2038_v49, 0.0 }
 0x3d3   :  { %701 = vadd.xlane.f32.xlu0 %v700_v50 }
 0x3e2   :  { %805 = vrot.lane.b32.xlu1 %v2299_v46, %s2142_s5 }
 0x3e6   :  { %799 = vrot.lane.b32.xlu1 %v2292_v42, %s2143_s27 }
 0x3e9   :  { %710 = vrot.lane.b32.xlu0 %v2273_v31, %s2136_s29 }
 0x3ed   :  { %803 = vrot.lane.b32.xlu0 %v2292_v42, %s2142_s5 }
 0x3f1   :  { %801 = vrot.lane.b32.xlu0 %v2299_v46, %s2143_s27 }
 0x446   :  { %v305_v53 = vpop.xlane.xlu1 %304 }
 0x447   :  { %2039 = vrcp.f32 %v305_v53 }
 0x448   :  { %v302_v54 = vpop.xlane.xlu0 %301 }
 0x449   :  { %2041 = vrcp.f32 %v302_v54 }
 0x452   :  { %v501_v55 = vpop.xlane.xlu1 %500 }
 0x453   :  { %2043 = vrcp.f32 %v501_v55 }
 0x454   :  { %v498_v56 = vpop.xlane.xlu0 %497  ;;  %v2040_v58 = vpop.eup %2039 }
 0x455   :  { %2045 = vrcp.f32 %v498_v56  ;;  %v309_v62 = vmul.f32 %v2040_v58, %v2028_v28 }
 0x456   :  { %v2042_v60 = vpop.eup %2041 }
 0x457   :  { %v307_v61 = vmul.f32 %v2042_v60, %v2030_v30 }
 0x459   :  { %1947 = vmatprep.mubr.msk.f32.mxu1 %vm287_vm2, %v307_v61 }
 0x45a   :  { %v705_v63 = vpop.xlane.xlu1 %704  ;;  %1948 = vmatmul.mubr.msk.f32.vlgmr.msra.gmra.mxu1 %vm287_vm2, %v309_v62  ;;  %v1033_v62 = vld [vmem:[%s2684_s7 + $0x80] sm:$0xff] }
 0x45b   :  { %1958 = vmatpush3.msra.mxu1 %v511_v40  ;;  %2047 = vrcp.f32 %v705_v63  ;;  %v1032_v63 = vld [vmem:[%s2684_s7 + $0x78] sm:$0xff] }
 0x45c   :  { %v702_v42 = vpop.xlane.xlu0 %701  ;;  %1959 = vmatprep.subr.mxu1 %v509_v51 }
 0x45d   :  { %2049 = vrcp.f32 %v702_v42  ;;  %1960 = vmatpush3.msra.mxu1 %v509_v51  ;;  %v1028_v42 = vld [vmem:[%s2684_s7 + $0x58] sm:$0xff] }
 0x45e   :  { %1971 = vmatprep.subr.mxu1 %v713_v52  ;;  %v806_v6 = vpop.permute.xlu1 %805 }
 0x460   :  { %v2044_v46 = vpop.eup %2043  ;;  %v711_v5 = vpop.permute.xlu0 %710 }
 0x461   :  { %v505_v4 = vmul.f32 %v2044_v46, %v2032_v41  ;;  %v1027_v46 = vld [vmem:[%s2684_s7 + $0x50] sm:$0xff] }
 0x462   :  { %v2046_v2 = vpop.eup %2045  ;;  %v800_v12 = vpop.permute.xlu1 %799 }
 0x463   :  { %v503_v3 = vmul.f32 %v2046_v2, %v2034_v44  ;;  %v1023_v2 = vld [vmem:[%s2684_s7 + $0x30] sm:$0xff] }
 0x464   :  { %v804_v13 = vpop.permute.xlu0 %803 }
 0x465   :  { %1961 = vmatprep.mubr.msk.f32.mxu1 %vm287_vm2, %v503_v3  ;;  %v1022_v3 = vld [vmem:[%s2684_s7 + $0x28] sm:$0xff] }
 0x466   :  { %1962 = vmatmul.mubr.msk.f32.vlgmr.msra.gmra.mxu1 %vm287_vm2, %v505_v4  ;;  %v1018_v4 = vld [vmem:[%s2684_s7 + $0x8] sm:$0xff] }
 0x467   :  { %1972 = vmatpush3.msra.mxu1 %v713_v52 }
 0x468   :  { %1973 = vmatprep.subr.mxu1 %v711_v5  ;;  %v2048_v7 = vpop.eup %2047  ;;  %v802_v14 = vpop.permute.xlu0 %801 }
 0x469   :  { %1974 = vmatpush3.msra.mxu1 %v711_v5  ;;  %v709_v11 = vmul.f32 %v2048_v7, %v2036_v47  ;;  %v1017_v5 = vld [vmem:[%s2684_s7] sm:$0xff] }
 0x46a   :  { %v2050_v8 = vpop.eup %2049  ;;  %1978 = vmatprep.subr.msk.mxu1 %vm203_vm1, %v806_v6 }
 0x46b   :  { %v707_v9 = vmul.f32 %v2050_v8, %v2038_v49 }
 0x46d   :  { %1975 = vmatprep.mubr.msk.f32.mxu1 %vm287_vm2, %v707_v9 }
 0x46e   :  { %1976 = vmatmul.mubr.msk.f32.vlgmr.msra.gmra.mxu1 %vm287_vm2, %v709_v11 }
 0x46f   :  { %1979 = vmatpush3.xpose.msk.msra.mxu1 %vm203_vm1, %v806_v6  ;;  %1982 = vmatprep.mubr.msk.f32.mxu1 %vm203_vm1, %v800_v12  ;;  %v1035_v6 = vld [vmem:[%s2684_s7 + $0x90] sm:$0xff] }
 0x470   :  { %1980 = vmatprep.subr.msk.mxu1 %vm203_vm1, %v804_v13 }
 0x473   :  { %1981 = vmatpush3.xpose.msk.msra.mxu1 %vm203_vm1, %v804_v13 }
 0x476   :  { %1983 = vmatmul.mubr.msk.f32.vlgmr.msra.gmra.mxu1 %vm203_vm1, %v802_v14 }
 0x477   :  { %1541 = vmatprep.mubr.f32.mxu1 %v2135_v10 }
 0x51a   :  { %v1949_v16 = vpop.f32.mrf.mxu1 }
 0x51b   :  { %v392_v20 = vadd.f32 %v1949_v16, %v196_v17  ;;  %v1034_v16 = vld [vmem:[%s2684_s7 + $0x88] sm:$0xff] }
 0x51c   :  { %v382_v19 = vpop.f32.mrf.mxu1 }
 0x51d   :  { %v391_v22 = vadd.f32 %v382_v19, %v195_v18  ;;  %v1030_v18 = vld [vmem:[%s2684_s7 + $0x68] sm:$0xff]  ;;  %v1029_v19 = vld [vmem:[%s2684_s7 + $0x60] sm:$0xff] }
 0x526   :  { %v1963_v21 = vpop.f32.mrf.mxu1 }
 0x527   :  { %v596_v23 = vadd.f32 %v1963_v21, %v392_v20  ;;  %v1025_v20 = vld [vmem:[%s2684_s7 + $0x40] sm:$0xff] }
 0x528   :  { %v586_v24 = vpop.f32.mrf.mxu1 }
 0x529   :  { %v595_v25 = vadd.f32 %v586_v24, %v391_v22  ;;  %v1024_v22 = vld [vmem:[%s2684_s7 + $0x38] sm:$0xff]  ;;  %v1019_v24 = vld [vmem:[%s2684_s7 + $0x10] sm:$0xff] }
 0x52e   :  { %v1977_v26 = vpop.f32.mrf.mxu1 }
 0x52f   :  { %v798_v27 = vadd.f32 %v1977_v26, %v596_v23  ;;  %v1020_v23 = vld [vmem:[%s2684_s7 + $0x18] sm:$0xff]  ;;  %v1031_v26 = vld [vmem:[%s2684_s7 + $0x70] sm:$0xff] }
 0x530   :  { %v788_v28 = vpop.f32.mrf.mxu1 }
 0x531   :  { %v797_v29 = vadd.f32 %v788_v28, %v595_v25  ;;  %v1036_v25 = vld [vmem:[%s2684_s7 + $0x98] sm:$0xff]  ;;  %v1021_v28 = vld [vmem:[%s2684_s7 + $0x20] sm:$0xff] }
 0x536   :  { %v1984_v30 = vpop.f32.mrf.mxu1 }
 0x537   :  { %v887_v32 = vadd.f32 %v1984_v30, %v2334_v57 }
 0x538   :  { %v881_v33 = vpop.f32.mrf.mxu1 }
 0x539   :  { %v882_v35 = vadd.f32 %v881_v33, %v2339_v59  ;;  %v893_v1 = vsel %vm287_vm2, %v887_v32, -inf }
 0x53a   :  { %894 = vmax.xlane.f32.xlu0 %v893_v1 }
 0x53b   :  { %v890_v0 = vsel %vm287_vm2, %v882_v35, -inf }
 0x53c   :  { %891 = vmax.xlane.f32.xlu1 %v890_v0  ;;  %v1037_v0 = vld [vmem:[%s2685_s8] sm:$0x1f] }
 0x5c3   :  { %v895_v36 = vpop.xlane.xlu0 %894 }
 0x5c4   :  { %v897_v37 = vsub.f32 %v887_v32, %v895_v36 }
 0x5c5   :  { %v892_v38 = vpop.xlane.xlu1 %891 }
 0x5c6   :  { %v900_v39 = vmul.f32 1.442695, %v897_v37  ;;  %v896_v40 = vsub.f32 %v882_v35, %v892_v38 }
 0x5c8   :  { %2051 = vpow2.f32 %v900_v39  ;;  %v898_v41 = vmul.f32 1.442695, %v896_v40 }
 0x5ca   :  { %2053 = vpow2.f32 %v898_v41 }
 0x5d5   :  { %v2052_v43 = vpop.eup %2051 }
 0x5d6   :  { %v905_v57 = vsel %vm287_vm2, %v2052_v43, 0.0 }
 0x5d7   :  { %v2054_v44 = vpop.eup %2053  ;;  %906 = vadd.xlane.f32.xlu1 %v905_v57 }
 0x5d8   :  { %v902_v59 = vsel %vm287_vm2, %v2054_v44, 0.0 }
 0x5d9   :  { %903 = vadd.xlane.f32.xlu0 %v902_v59 }
 0x5e8   :  { %912 = vrot.lane.b32.xlu1 %v2273_v31, %s2144_s6 }
 0x5ef   :  { %914 = vrot.lane.b32.xlu0 %v2276_v34, %s2144_s6 }
 0x660   :  { %v907_v45 = vpop.xlane.xlu1 %906 }
 0x661   :  { %2055 = vrcp.f32 %v907_v45 }
 0x662   :  { %v904_v47 = vpop.xlane.xlu0 %903 }
 0x663   :  { %2057 = vrcp.f32 %v904_v47 }
 0x664   :  { %v913_v49 = vpop.permute.xlu1 %912 }
 0x666   :  { %v915_v48 = vpop.permute.xlu0 %914 }
 0x667   :  { %1985 = vmatprep.subr.mxu0 %v915_v48 }
 0x668   :  { %1986 = vmatpush3.msra.mxu0 %v915_v48 }
 0x669   :  { %1987 = vmatprep.subr.mxu0 %v913_v49 }
 0x66a   :  { %1988 = vmatpush3.msra.mxu0 %v913_v49 }
 0x66b   :  { %1094 = vmatprep.subr.mxu0 %v1033_v62 }
 0x66e   :  { %v2056_v50 = vpop.eup %2055 }
 0x66f   :  { %v911_v53 = vmul.f32 %v2056_v50, %v2052_v43 }
 0x670   :  { %v2058_v51 = vpop.eup %2057 }
 0x671   :  { %v909_v52 = vmul.f32 %v2058_v51, %v2054_v44 }
 0x673   :  { %1989 = vmatprep.mubr.msk.f32.mxu0 %vm287_vm2, %v909_v52 }
 0x674   :  { %1990 = vmatmul.mubr.msk.f32.vlgmr.msra.gmra.mxu0 %vm287_vm2, %v911_v53 }
 0x675   :  { %1134 = vmatprep.mubr.f32.mxu0 %v2135_v10  ;;  %1095 = vmatpush1.msra.mxu0 %v1032_v63 }
 0x676   :  { %1096 = vmatprep.subr.mxu0 %v1028_v42 }
 0x677   :  { %1097 = vmatpush1.msra.mxu0 %v1027_v46 }
 0x678   :  { %1098 = vmatprep.subr.mxu0 %v1023_v2 }
 0x679   :  { %1099 = vmatpush1.msra.mxu0 %v1022_v3 }
 0x67a   :  { %1100 = vmatprep.subr.mxu0 %v1018_v4 }
 0x67b   :  { %1101 = vmatpush1.msra.mxu0 %v1017_v5 }
 0x67c   :  { %1171 = vmatprep.subr.mxu0 %v1035_v6 }
 0x734   :  { %v1991_v31 = vpop.f32.mrf.mxu0 }
 0x735   :  { %v2400_v34 = vadd.f32 %v1991_v31, %v798_v27  ;;  %v1026_v27 = vld [vmem:[%s2684_s7 + $0x48] sm:$0xff] }
 0x736   :  { %v990_v54 = vpop.f32.mrf.mxu0 }
 0x737   :  { %v2402_v55 = vadd.f32 %v990_v54, %v797_v29  ;;  %v1002_v56 = vmul.f32 %v2400_v34, %v2400_v34  ;;  %v1039_v29 = vlaneseq }
 0x739   :  { %v1006_v58 = vsel %vm49_vm0, %v1002_v56, 0.0  ;;  %v1001_v60 = vmul.f32 %v2402_v55, %v2402_v55  ;;  %v1040_v30 = vshrl.u32 %v1039_v29, 7 }
 0x73a   :  { %1007 = vadd.xlane.f32.xlu0 %v1006_v58 }
 0x73b   :  { %v1003_v61 = vsel %vm49_vm0, %v1001_v60, 0.0  ;;  %v1049_v33 = vsub.s32 2, %v1040_v30  ;;  %v1053_v1 = vsub.s32 3, %v1040_v30  ;;  %v1057_v43 = vsub.s32 4, %v1040_v30 }
 0x73c   :  { %1004 = vadd.xlane.f32.xlu1 %v1003_v61  ;;  %v1041_v6 = vsub.s32 0, %v1040_v30 }
 0x73d   :  { %v1050_v37 = vrot.slane %v1037_v0, %v1049_v33  ;;  %v1054_v39 = vrot.slane %v1037_v0, %v1053_v1  ;;  %v1058_v49 = vrot.slane %v1037_v0, %v1057_v43 }
 0x7c3   :  { %v1008_v7 = vpop.xlane.xlu0 %1007 }
 0x7c4   :  { %v1010_v8 = vmul.f32 0.03125, %v1008_v7  ;;  %v1045_v7 = vsub.s32 1, %v1040_v30 }
 0x7c5   :  { %v1005_v9 = vpop.xlane.xlu1 %1004 }
 0x7c6   :  { %v1009_v11 = vmul.f32 0.03125, %v1005_v9  ;;  %v1012_v12 = vadd.f32 1e-05, %v1010_v8  ;;  %v1042_v8 = vrot.slane %v1037_v0, %v1041_v6  ;;  %v1046_v9 = vrot.slane %v1037_v0, %v1045_v7 }
 0x7c8   :  { %v1011_v13 = vadd.f32 1e-05, %v1009_v11 }
 0x7ca   :  { %2059 = vrsqrt.f32 %v1011_v13 }
 0x7cb   :  { %2061 = vrsqrt.f32 %v1012_v12 }
 0x7d7   :  { %v2060_v14 = vpop.eup %2059 }
 0x7d8   :  { %v1015_v15 = vmul.f32 %v2060_v14, %v2402_v55  ;;  %v2062_v17 = vpop.eup %2061 }
 0x7d9   :  { %v1016_v21 = vmul.f32 %v2062_v17, %v2400_v34 }
 0x7da   :  { %1838 = vmatmul.mubr.msk.f32.vlgmr.msra.gmra.mxu0 %vm49_vm0, %v1015_v15 }
 0x7db   :  { %1172 = vmatpush1.msra.mxu0 %v1034_v16  ;;  %1140 = vmatprep.mubr.f32.mxu0 %v2135_v10 }
 0x7dc   :  { %1173 = vmatprep.subr.mxu0 %v1030_v18 }
 0x7dd   :  { %1174 = vmatpush1.msra.mxu0 %v1029_v19 }
 0x7de   :  { %1175 = vmatprep.subr.mxu0 %v1025_v20  ;;  %1839 = vmatmul.mubr.msk.f32.gmra.mxu0 %vm49_vm0, %v1016_v21 }
 0x7df   :  { %1176 = vmatpush1.msra.mxu0 %v1024_v22  ;;  %1211 = vmatprep.mubr.f32.mxu0 %v2135_v10 }
 0x7e0   :  { %1177 = vmatprep.subr.mxu0 %v1020_v23 }
 0x7e1   :  { %1178 = vmatpush1.msra.mxu0 %v1019_v24 }
 0x7e2   :  { %1992 = vmatprep.subr.mxu0 %v1036_v25  ;;  %1840 = vmatmul.mubr.msk.f32.vlgmr.msra.gmra.mxu0 %vm49_vm0, %v1015_v15 }
 0x7e3   :  { %1993 = vmatpush3.msra.mxu0 %v1036_v25  ;;  %1217 = vmatprep.mubr.f32.mxu0 %v2135_v10 }
 0x7e4   :  { %1994 = vmatprep.subr.mxu0 %v1031_v26 }
 0x7e5   :  { %1995 = vmatpush3.msra.mxu0 %v1031_v26 }
 0x7e6   :  { %1996 = vmatprep.subr.mxu0 %v1026_v27  ;;  %1841 = vmatmul.mubr.msk.f32.gmra.mxu0 %vm49_vm0, %v1016_v21 }
 0x7e7   :  { %1997 = vmatpush3.msra.mxu0 %v1026_v27  ;;  %2000 = vmatprep.mubr.msk.f32.mxu0 %vm49_vm0, %v1015_v15 }
 0x7e8   :  { %1998 = vmatprep.subr.mxu0 %v1021_v28 }
 0x7e9   :  { %1999 = vmatpush3.msra.mxu0 %v1021_v28 }
 0x7ea   :  { %2001 = vmatmul.mubr.msk.f32.vlgmr.msra.gmra.mxu0 %vm49_vm0, %v1016_v21 }
 0x89a   :  { %v1136_v32 = vpop.f32.mrf.mxu0 }
 0x89b   :  { %v1137_v12 = vadd.f32 %v1136_v32, %v1042_v8 }
 0x89c   :  { %v1138_v35 = vpop.f32.mrf.mxu0 }
 0x89d   :  { %v1139_v15 = vadd.f32 %v1138_v35, %v1046_v9 }
 0x89e   :  { %v1142_v36 = vpop.f32.mrf.mxu0 }
 0x89f   :  { %v1143_v19 = vadd.f32 %v1142_v36, %v1042_v8 }
 0x8a0   :  { %v1144_v38 = vpop.f32.mrf.mxu0 }
 0x8a1   :  { %v1145_v23 = vadd.f32 %v1144_v38, %v1046_v9 }
 0x8a2   :  { %v1213_v40 = vpop.f32.mrf.mxu0 }
 0x8a3   :  { %v1214_v41 = vadd.f32 %v1213_v40, %v1050_v37  ;;  %v2498_v40 = vand.u32 127, %v1039_v29 }
 0x8a4   :  { %v1215_v57 = vpop.f32.mrf.mxu0 }
 0x8a5   :  { %v1844_v44 = vmul.f32 -1.442695, %v1214_v41  ;;  %v1216_v59 = vadd.f32 %v1215_v57, %v1054_v39  ;;  %vm1324_vm4 = vcmp.lt.s32.totalorder %v2498_v40, 1 }
 0x8a6   :  { %v1219_v45 = vpop.f32.mrf.mxu0 }
 0x8a7   :  { %2063 = vpow2.f32 %v1844_v44  ;;  %v1845_v47 = vmul.f32 -1.442695, %v1216_v59  ;;  %v1220_v48 = vadd.f32 %v1219_v45, %v1050_v37 }
 0x8a8   :  { %v1221_v50 = vpop.f32.mrf.mxu0 }
 0x8a9   :  { %2065 = vpow2.f32 %v1845_v47  ;;  %v1846_v51 = vmul.f32 -1.442695, %v1220_v48  ;;  %v1222_v52 = vadd.f32 %v1221_v50, %v1054_v39 }
 0x8aa   :  { %v2002_v53 = vpop.f32.mrf.mxu0 }
 0x8ab   :  { %2067 = vpow2.f32 %v1846_v51  ;;  %v1847_v31 = vmul.f32 -1.442695, %v1222_v52  ;;  %v1296_v54 = vadd.f32 %v2002_v53, %v1058_v49 }
 0x8ac   :  { %v1290_v56 = vpop.f32.mrf.mxu0 }
 0x8ad   :  { %2069 = vpow2.f32 %v1847_v31  ;;  %v1291_v58 = vadd.f32 %v1290_v56, %v1058_v49  ;;  %v1303_v60 = vsel %vm1299_vm3, %v1296_v54, -inf }
 0x8ae   :  { %1304 = vmax.xlane.f32.xlu1 %v1303_v60 }
 0x8af   :  { %v1300_v61 = vsel %vm1299_vm3, %v1291_v58, -inf }
 0x8b0   :  { %1301 = vmax.xlane.f32.xlu0 %v1300_v61 }
 0x8b4   :  { %v2064_v62 = vpop.eup %2063 }
 0x8b5   :  { %v1443_v63 = vadd.f32 1.0, %v2064_v62 }
 0x8b6   :  { %v2066_v42 = vpop.eup %2065 }
 0x8b7   :  { %2071 = vrcp.f32 %v1443_v63  ;;  %v1444_v46 = vadd.f32 1.0, %v2066_v42 }
 0x8b8   :  { %v2068_v2 = vpop.eup %2067 }
 0x8b9   :  { %2073 = vrcp.f32 %v1444_v46  ;;  %v1445_v3 = vadd.f32 1.0, %v2068_v2 }
 0x8ba   :  { %v2070_v4 = vpop.eup %2069 }
 0x8bb   :  { %2075 = vrcp.f32 %v1445_v3  ;;  %v1446_v5 = vadd.f32 1.0, %v2070_v4 }
 0x8bd   :  { %2077 = vrcp.f32 %v1446_v5 }
 0x8c4   :  { %v2072_v11 = vpop.eup %2071 }
 0x8c5   :  { %v1455_v13 = vmul.f32 %v2072_v11, %v1214_v41 }
 0x8c6   :  { %v2074_v14 = vpop.eup %2073 }
 0x8c7   :  { %v1456_v16 = vmul.f32 %v2074_v14, %v1216_v59  ;;  %v2487_v17 = vmul.f32 %v1455_v13, %v1137_v12 }
 0x8c8   :  { %v2076_v18 = vpop.eup %2075 }
 0x8c9   :  { %v1457_v20 = vmul.f32 %v2076_v18, %v1220_v48  ;;  %v2489_v21 = vmul.f32 %v1456_v16, %v1139_v15 }
 0x8ca   :  { %v2078_v22 = vpop.eup %2077 }
 0x8cb   :  { %v1458_v24 = vmul.f32 %v2078_v22, %v1222_v52  ;;  %v2491_v25 = vmul.f32 %v1457_v20, %v1143_v19 }
 0x8cd   :  { %v2493_v26 = vmul.f32 %v1458_v24, %v1145_v23 }
 0x937   :  { %v1305_v27 = vpop.xlane.xlu1 %1304 }
 0x938   :  { %v1307_v28 = vsub.f32 %v1296_v54, %v1305_v27 }
 0x939   :  { %v1302_v30 = vpop.xlane.xlu0 %1301 }
 0x93a   :  { %v1310_v32 = vmul.f32 1.442695, %v1307_v28  ;;  %v1306_v33 = vsub.f32 %v1291_v58, %v1302_v30 }
 0x93c   :  { %2079 = vpow2.f32 %v1310_v32  ;;  %v1308_v35 = vmul.f32 1.442695, %v1306_v33 }
 0x93e   :  { %2081 = vpow2.f32 %v1308_v35 }
 0x949   :  { %v2080_v1 = vpop.eup %2079 }
 0x94a   :  { %v1315_v0 = vsel %vm1299_vm3, %v2080_v1, 0.0 }
 0x94b   :  { %v2082_v36 = vpop.eup %2081  ;;  %1316 = vadd.xlane.f32.xlu1 %v1315_v0 }
 0x94c   :  { %v1312_v37 = vsel %vm1299_vm3, %v2082_v36, 0.0 }
 0x94d   :  { %1313 = vadd.xlane.f32.xlu0 %v1312_v37 }
 0x9d4   :  { %v1317_v38 = vpop.xlane.xlu1 %1316 }
 0x9d5   :  { %2083 = vrcp.f32 %v1317_v38 }
 0x9d6   :  { %v1314_v39 = vpop.xlane.xlu0 %1313 }
 0x9d7   :  { %2085 = vrcp.f32 %v1314_v39 }
 0x9e2   :  { %v2084_v41 = vpop.eup %2083 }
 0x9e3   :  { %v2501_v43 = vmul.f32 %v2084_v41, %v2080_v1 }
 0x9e4   :  { %v2086_v57 = vpop.eup %2085 }
 0x9e5   :  { %v2503_v44 = vmul.f32 %v2086_v57, %v2082_v36  ;;  %v1326_v59 = vsel %vm1324_vm4, -inf, %v2501_v43 }
 0x9e6   :  { %v1330_v45 = vsel %vm1299_vm3, %v1326_v59, -inf }
 0x9e7   :  { %1331 = vmax.xlane.f32.xlu1 %v1330_v45  ;;  %v1325_v29 = vsel %vm1324_vm4, -inf, %v2503_v44 }
 0x9e8   :  { %v1327_v47 = vsel %vm1299_vm3, %v1325_v29, -inf }
 0x9e9   :  { %1328 = vmax.xlane.f32.xlu0 %v1327_v47 }
 0xa70   :  { %v1332_v48 = vpop.xlane.xlu1 %1331 }
 0xa71   :  { %vm1334_vm5 = vcmp.eq.f32.partialorder %v1326_v59, %v1332_v48 }
 0xa72   :  { %v1336_v49 = vsel %vm1334_vm5, %v2498_v40, 4  ;;  %v1329_v50 = vpop.xlane.xlu0 %1328 }
 0xa73   :  { %v1352_v51 = vsel %vm1299_vm3, %v1336_v49, 2147483647  ;;  %vm1333_vm6 = vcmp.eq.f32.partialorder %v1325_v29, %v1329_v50 }
 0xa74   :  { %v1335_v52 = vsel %vm1333_vm6, %v2498_v40, 4  ;;  %v1354_v53 = vshra.s32 %v1352_v51, 16  ;;  %v1353_v60 = vand.u32 65535, %v1352_v51  ;;  %vm1779_vm6 = vcmask 0  }
 0xa75   :  { %v1337_v31 = vsel %vm1299_vm3, %v1335_v52, 2147483647 }
 0xa76   :  { %v1356_v54 = vcvt.s32.f32 %v1354_v53  ;;  %v1339_v56 = vshra.s32 %v1337_v31, 16  ;;  %v1338_v61 = vand.u32 65535, %v1337_v31  ;;  %v1355_v63 = vcvt.s32.f32 %v1353_v60 }
 0xa78   :  { %1357 = vmin.xlane.f32.xlu1 %v1356_v54  ;;  %v1341_v58 = vcvt.s32.f32 %v1339_v56  ;;  %v1340_v2 = vcvt.s32.f32 %v1338_v61 }
 0xa7a   :  { %1342 = vmin.xlane.f32.xlu0 %v1341_v58 }
 0xb01   :  { %v1358_v62 = vpop.xlane.xlu1 %1357 }
 0xb02   :  { %vm1359_vm7 = vcmp.eq.f32.partialorder %v1356_v54, %v1358_v62  ;;  %v1364_v4 = vcvt.f32.s32 %v1358_v62 }
 0xb03   :  { %v1343_v42 = vpop.xlane.xlu0 %1342  ;;  %v1360_v46 = vsel %vm1359_vm7, %v1355_v63, inf }
 0xb04   :  { %1361 = vmin.xlane.f32.xlu1 %v1360_v46  ;;  %vm1344_vm8 = vcmp.eq.f32.partialorder %v1341_v58, %v1343_v42  ;;  %v1349_v5 = vcvt.f32.s32 %v1343_v42  ;;  %v1365_v7 = vshll.u32 %v1364_v4, 16 }
 0xb05   :  { %v1345_v3 = vsel %vm1344_vm8, %v1340_v2, inf }
 0xb06   :  { %1346 = vmin.xlane.f32.xlu0 %v1345_v3  ;;  %v1350_v11 = vshll.u32 %v1349_v5, 16 }
 0xb8d   :  { %v1362_v6 = vpop.xlane.xlu1 %1361 }
 0xb8e   :  { %v1363_v8 = vcvt.f32.s32 %v1362_v6 }
 0xb8f   :  { %v1347_v9 = vpop.xlane.xlu0 %1346 }
 0xb90   :  { %v1366_v12 = vadd.s32 %v1365_v7, %v1363_v8  ;;  %v1348_v13 = vcvt.f32.s32 %v1347_v9 }
 0xb92   :  { %v1351_v14 = vadd.s32 %v1350_v11, %v1348_v13  ;;  %vm1368_vm9 = vcmp.eq.s32.totalorder %v2498_v40, %v1366_v12 }
 0xb93   :  { %v1372_v15 = vsel %vm1368_vm9, -inf, %v1326_v59  ;;  %v1763_v59 = vsel %vm1299_vm3, %v2503_v44, 0.0  ;;  %v1370_v58 = vsel %vm1368_vm9, %v2501_v43, 0.0 }
 0xb94   :  { %v1376_v16 = vsel %vm1299_vm3, %v1372_v15, -inf  ;;  %vm1367_vm10 = vcmp.eq.s32.totalorder %v2498_v40, %v1351_v14 }
 0xb95   :  { %1377 = vmax.xlane.f32.xlu1 %v1376_v16  ;;  %v1371_v18 = vsel %vm1367_vm10, -inf, %v1325_v29  ;;  %v1764_v29 = vsel %vm1299_vm3, %v2501_v43, 0.0  ;;  %v1369_v62 = vsel %vm1367_vm10, %v2503_v44, 0.0 }
 0xb96   :  { %v1373_v19 = vsel %vm1299_vm3, %v1371_v18, -inf  ;;  %v1765_v48 = vadd.f32 %v1764_v29, %v1763_v59  ;;  %v1572_v59 = vld [vmem:[%s2686_s9 + $0x70] sm:$0xff]  ;;  %v1571_v29 = vld [vmem:[%s2686_s9 + $0x68] sm:$0xff] }
 0xb97   :  { %1374 = vmax.xlane.f32.xlu0 %v1373_v19  ;;  %v1590_v19 = vld [vmem:[%s2687_s10] sm:$0xf] }
 0xb98   :  { %v1766_v56 = vrot.slane %v1765_v48, 4 }
 0xb9a   :  { %v1767_v42 = vadd.f32 %v1766_v56, %v1765_v48  ;;  %v1585_v48 = vld [vmem:[%s2686_s9 + $0xd8] sm:$0xff] }
 0xb9b   :  { %v1581_v56 = vld [vmem:[%s2686_s9 + $0xb8] sm:$0xff] }
 0xc1e   :  { %v1378_v20 = vpop.xlane.xlu1 %1377 }
 0xc1f   :  { %vm1380_vm11 = vcmp.eq.f32.partialorder %v1372_v15, %v1378_v20 }
 0xc20   :  { %v1382_v22 = vsel %vm1380_vm11, %v2498_v40, 4  ;;  %v1375_v23 = vpop.xlane.xlu0 %1374 }
 0xc21   :  { %v1398_v24 = vsel %vm1299_vm3, %v1382_v22, 2147483647  ;;  %vm1379_vm12 = vcmp.eq.f32.partialorder %v1371_v18, %v1375_v23  ;;  %v1463_v18 = vld [vmem:[%s2688_s11] sm:$0xff] }
 0xc22   :  { %v1381_v27 = vsel %vm1379_vm12, %v2498_v40, 4  ;;  %v1400_v28 = vshra.s32 %v1398_v24, 16  ;;  %v1399_v1 = vand.u32 65535, %v1398_v24  ;;  %v1465_v20 = vcombine.high %v1463_v18, %v1463_v18 }
 0xc23   :  { %v1383_v30 = vsel %vm1299_vm3, %v1381_v27, 2147483647 }
 0xc24   :  { %v1402_v32 = vcvt.s32.f32 %v1400_v28  ;;  %v1385_v33 = vshra.s32 %v1383_v30, 16  ;;  %v1384_v0 = vand.u32 65535, %v1383_v30  ;;  %v1401_v37 = vcvt.s32.f32 %v1399_v1  ;;  %v1589_v30 = vld [vmem:[%s2686_s9 + $0xf8] sm:$0xff] }
 0xc26   :  { %1403 = vmin.xlane.f32.xlu1 %v1402_v32  ;;  %v1387_v35 = vcvt.s32.f32 %v1385_v33  ;;  %v1386_v41 = vcvt.s32.f32 %v1384_v0 }
 0xc28   :  { %1388 = vmin.xlane.f32.xlu0 %v1387_v35 }
 0xcaf   :  { %v1404_v36 = vpop.xlane.xlu1 %1403 }
 0xcb0   :  { %vm1405_vm13 = vcmp.eq.f32.partialorder %v1402_v32, %v1404_v36  ;;  %v1410_v45 = vcvt.f32.s32 %v1404_v36 }
 0xcb1   :  { %v1389_v38 = vpop.xlane.xlu0 %1388  ;;  %v1406_v39 = vsel %vm1405_vm13, %v1401_v37, inf }
 0xcb2   :  { %1407 = vmin.xlane.f32.xlu1 %v1406_v39  ;;  %vm1390_vm14 = vcmp.eq.f32.partialorder %v1387_v35, %v1389_v38  ;;  %v1395_v47 = vcvt.f32.s32 %v1389_v38  ;;  %v1411_v50 = vshll.u32 %v1410_v45, 16  ;;  %v1573_v39 = vld [vmem:[%s2686_s9 + $0x78] sm:$0xff]  ;;  %v1587_v45 = vld [vmem:[%s2686_s9 + $0xe8] sm:$0xff] }
 0xcb3   :  { %v1391_v57 = vsel %vm1390_vm14, %v1386_v41, inf  ;;  %v1588_v41 = vld [vmem:[%s2686_s9 + $0xf0] sm:$0xff] }
 0xcb4   :  { %1392 = vmin.xlane.f32.xlu0 %v1391_v57  ;;  %v1396_v53 = vshll.u32 %v1395_v47, 16  ;;  %v1570_v47 = vld [vmem:[%s2686_s9 + $0x60] sm:$0xff] }
 0xd3b   :  { %v1408_v49 = vpop.xlane.xlu1 %1407 }
 0xd3c   :  { %v1409_v51 = vcvt.f32.s32 %v1408_v49  ;;  %v1569_v49 = vld [vmem:[%s2686_s9 + $0x58] sm:$0xff] }
 0xd3d   :  { %v1393_v52 = vpop.xlane.xlu0 %1392 }
 0xd3e   :  { %v1412_v31 = vadd.s32 %v1411_v50, %v1409_v51  ;;  %v1394_v54 = vcvt.f32.s32 %v1393_v52  ;;  %v1584_v50 = vld [vmem:[%s2686_s9 + $0xd0] sm:$0xff]  ;;  %v1583_v52 = vld [vmem:[%s2686_s9 + $0xc8] sm:$0xff] }
 0xd3f   :  { %v1568_v51 = vld [vmem:[%s2686_s9 + $0x50] sm:$0xff] }
 0xd40   :  { %vm1414_vm15 = vcmp.eq.s32.totalorder %v2498_v40, %v1412_v31  ;;  %v1397_v60 = vadd.s32 %v1396_v53, %v1394_v54  ;;  %v1567_v53 = vld [vmem:[%s2686_s9 + $0x48] sm:$0xff]  ;;  %v1582_v31 = vld [vmem:[%s2686_s9 + $0xc0] sm:$0xff] }
 0xd41   :  { %v1416_v61 = vsel %vm1414_vm15, %v2501_v43, %v1370_v58  ;;  %v1566_v54 = vld [vmem:[%s2686_s9 + $0x40] sm:$0xff]  ;;  %v1565_v58 = vld [vmem:[%s2686_s9 + $0x38] sm:$0xff] }
 0xd42   :  { %vm1413_vm1 = vcmp.eq.s32.totalorder %v2498_v40, %v1397_v60  ;;  %v1418_v63 = vsel %vm1324_vm4, %v2501_v43, %v1416_v61  ;;  %v1768_v43 = vrot.slane %v1767_v42, 2  ;;  %v1580_v60 = vld [vmem:[%s2686_s9 + $0xb0] sm:$0xff] }
 0xd43   :  { %v1422_v46 = vsel %vm1299_vm3, %v1418_v63, 0.0  ;;  %vm1749_vm2 = vcmp.gt.f32.partialorder %v1418_v63, 0.0  ;;  %v1415_v2 = vsel %vm1413_vm1, %v2503_v44, %v1369_v62  ;;  %v1564_v61 = vld [vmem:[%s2686_s9 + $0x30] sm:$0xff]  ;;  %v1579_v62 = vld [vmem:[%s2686_s9 + $0xa8] sm:$0xff] }
 0xd44   :  { %v1856_v3 = vsel %vm1749_vm2, 1.0, %v2135_v10  ;;  %1423 = vadd.xlane.f32.xlu1 %v1422_v46  ;;  %v1417_v4 = vsel %vm1324_vm4, %v2503_v44, %v1415_v2  ;;  %v1769_v12 = vadd.f32 %v1768_v43, %v1767_v42  ;;  %vm1472_vm4 = vcmask 1043456   ;;  %v1578_v42 = vld [vmem:[%s2686_s9 + $0xa0] sm:$0xff]  ;;  %v1577_v2 = vld [vmem:[%s2686_s9 + $0x98] sm:$0xff]  ;;  %v1559_v43 = vld [vmem:[%s2686_s9 + $0x8] sm:$0xff] }
 0xd45   :  { %v1419_v5 = vsel %vm1299_vm3, %v1417_v4, 0.0  ;;  %vm1748_vm5 = vcmp.gt.f32.partialorder %v1417_v4, 0.0  ;;  %v1755_v7 = vsel %vm1299_vm3, %v1856_v3, 0.0  ;;  %2003 = vmatprep.subr.msk.mxu0 %vm1472_vm4, %v1590_v19  ;;  %1848 = vmatprep.subr.msk.mxu1 %vm1472_vm4, %v1465_v20  ;;  %v1562_v46 = vld [vmem:[%s2686_s9 + $0x20] sm:$0xff]  ;;  %v1561_v3 = vld [vmem:[%s2686_s9 + $0x18] sm:$0xff] }
 0xd46   :  { %v1855_v6 = vsel %vm1748_vm5, 1.0, %v2135_v10  ;;  %1420 = vadd.xlane.f32.xlu0 %v1419_v5  ;;  %v1770_v15 = vrot.slane %v1769_v12, 1  ;;  %2004 = vmatpush3.msk.msra.mxu0 %vm1472_vm4, %v1590_v19  ;;  %v1560_v5 = vld [vmem:[%s2686_s9 + $0x10] sm:$0xff] }
 0xd47   :  { %v1754_v8 = vsel %vm1299_vm3, %v1855_v6, 0.0  ;;  %1849 = vmatpush1.msk.msra.mxu1 %vm1472_vm4, %v1463_v18  ;;  %v1575_v6 = vld [vmem:[%s2686_s9 + $0x88] sm:$0xff] }
 0xd48   :  { %v1756_v9 = vadd.f32 %v1755_v7, %v1754_v8  ;;  %v1771_v44 = vadd.f32 %v1770_v15, %v1769_v12  ;;  %1898 = vmatprep.subr.mxu1 %v1589_v30  ;;  %v1574_v7 = vld [vmem:[%s2686_s9 + $0x80] sm:$0xff] }
 0xd49   :  { %v1558_v8 = vld [vmem:[%s2686_s9] sm:$0xff] }
 0xd4a   :  { %v1757_v11 = vrot.slane %v1756_v9, 4  ;;  %v1774_v24 = vmul.f32 0.0625, %v1771_v44 }
 0xd4c   :  { %v1758_v13 = vadd.f32 %v1757_v11, %v1756_v9 }
 0xd4e   :  { %v1759_v14 = vrot.slane %v1758_v13, 2 }
 0xd50   :  { %v1760_v16 = vadd.f32 %v1759_v14, %v1758_v13 }
 0xd52   :  { %v1761_v40 = vrot.slane %v1760_v16, 1 }
 0xd54   :  { %v1762_v22 = vadd.f32 %v1761_v40, %v1760_v16 }
 0xd56   :  { %v1772_v23 = vmul.f32 0.083333336, %v1762_v22 }
 0xd58   :  { %v1775_v27 = vmul.f32 %v1774_v24, %v1772_v23 }
 0xd5a   :  { %v1776_v28 = vsel %vm1299_vm3, %v1775_v27, 0.0 }
 0xd5b   :  { %1777 = vadd.xlane.f32.xlu0 %v1776_v28 }
 0xdcd   :  { %v1424_v32 = vpop.xlane.xlu1 %1423 }
 0xdce   :  { %v1426_v33 = vadd.f32 1e-08, %v1424_v32 }
 0xdcf   :  { %v1421_v35 = vpop.xlane.xlu0 %1420 }
 0xdd0   :  { %v1425_v1 = vadd.f32 1e-08, %v1421_v35  ;;  %2087 = vrcp.f32 %v1426_v33 }
 0xdd2   :  { %2089 = vrcp.f32 %v1425_v1 }
 0xddd   :  { %v2088_v0 = vpop.eup %2087 }
 0xdde   :  { %v1430_v38 = vmul.f32 %v2088_v0, %v1418_v63  ;;  %v1563_v63 = vld [vmem:[%s2686_s9 + $0x28] sm:$0xff] }
 0xddf   :  { %v2090_v36 = vpop.eup %2089 }
 0xde0   :  { %v1428_v37 = vmul.f32 %v2090_v36, %v1417_v4  ;;  %v1576_v4 = vld [vmem:[%s2686_s9 + $0x90] sm:$0xff] }
 0xde2   :  { %1850 = vmatmul.mubr.msk.f32.vlgmr.msra.gmra.mxu1 %vm1299_vm3, %v1428_v37  ;;  %2005 = vmatprep.mubr.msk.f32.mxu0 %vm1299_vm3, %v1428_v37 }
 0xde3   :  { %2006 = vmatmul.mubr.msk.f32.vlgmr.msra.gmra.mxu0 %vm1299_vm3, %v1430_v38  ;;  %1547 = vmatprep.mubr.f32.mxu1 %v2135_v10  ;;  %v1586_v10 = vld [vmem:[%s2686_s9 + $0xe0] sm:$0xff]  ;;  %s2091_s9 = scalar_lea.vmem %s1800_s3, 16 }
 0xde4   :  { %v1778_v57 = vpop.xlane.xlu0 %1777  ;;  %1899 = vmatpush3.msra.mxu1 %v1573_v39  ;;  %p2092_p0 = scmp.ne.s32.totalorder %s1800_s3, %s2091_s9  ;;  %p2097_p2 = scmp.lt.s32.totalorder %s2095_s0, %s2091_s9 }
 0xde5   :  { %1780 = vst.msk [vmem:[#allocation4] sm:$0x1] %vm1779_vm6, %v1778_v57  ;;  %1900 = vmatprep.subr.mxu1 %v1588_v41 }
 0xde6   :  { %1851 = vmatmul.mubr.msk.f32.gmra.mxu1 %vm1299_vm3, %v1430_v38  ;;  %p2098_p3 = por %p2097_p2, %p2096_p1 }
 0xde7   :  { %1901 = vmatpush3.msra.mxu1 %v1572_v59 }
 0xde8   :  { %1902 = vmatprep.subr.mxu1 %v1587_v45  ;;  %p2099_p4 = pnand %p2098_p3, %p2092_p0 }
 0xde9   :  { %1903 = vmatpush3.msra.mxu1 %v1571_v29 }
 0xdea   :  { %1904 = vmatprep.subr.mxu1 %v1586_v10 }
 0xdeb   :  { %1905 = vmatpush3.msra.mxu1 %v1570_v47 }
 0xdec   :  { %1906 = vmatprep.subr.mxu1 %v1585_v48 }
 0xded   :  { %1907 = vmatpush3.msra.mxu1 %v1569_v49 }
 0xdee   :  { %1908 = vmatprep.subr.mxu1 %v1584_v50 }
 0xdef   :  { %1909 = vmatpush3.msra.mxu1 %v1568_v51 }
 0xdf0   :  { %1910 = vmatprep.subr.mxu1 %v1583_v52 }
 0xdf1   :  { %1911 = vmatpush3.msra.mxu1 %v1567_v53 }
 0xdf2   :  { %1912 = vmatprep.subr.mxu1 %v1582_v31 }
 0xdf3   :  { %1913 = vmatpush3.msra.mxu1 %v1566_v54 }
 0xdf4   :  { %1914 = vmatprep.subr.mxu1 %v1581_v56 }
 0xdf5   :  { %1915 = vmatpush3.msra.mxu1 %v1565_v58 }
 0xdf6   :  { %1916 = vmatprep.subr.mxu1 %v1580_v60 }
 0xdf7   :  { %1917 = vmatpush3.msra.mxu1 %v1564_v61 }
 0xdf8   :  { %1918 = vmatprep.subr.mxu1 %v1579_v62 }
 0xdf9   :  { %1919 = vmatpush3.msra.mxu1 %v1563_v63 }
 0xdfa   :  { %1920 = vmatprep.subr.mxu1 %v1578_v42 }
 0xdfb   :  { %1921 = vmatpush3.msra.mxu1 %v1562_v46 }
 0xdfc   :  { %1922 = vmatprep.subr.mxu1 %v1577_v2 }
 0xdfd   :  { %1923 = vmatpush3.msra.mxu1 %v1561_v3 }
 0xdfe   :  { %1924 = vmatprep.subr.mxu1 %v1576_v4 }
 0xdff   :  { %1925 = vmatpush3.msra.mxu1 %v1560_v5 }
 0xe00   :  { %1926 = vmatprep.subr.mxu1 %v1575_v6 }
 0xe01   :  { %1927 = vmatpush3.msra.mxu1 %v1559_v43 }
 0xe02   :  { %1928 = vmatprep.subr.mxu1 %v1574_v7 }
 0xe03   :  { %1929 = vmatpush3.msra.mxu1 %v1558_v8 }
 0xea2   :  { %v1543_v9 = vpop.f32.mrf.mxu1 }
 0xea3   :  { %v1554_v13 = vmul.f32 %v1543_v9, %v2487_v17 }
 0xea4   :  { %v1545_v11 = vpop.f32.mrf.mxu1 }
 0xea5   :  { %v1555_v12 = vmul.f32 %v1545_v11, %v2489_v21 }
 0xea6   :  { %v1549_v14 = vpop.f32.mrf.mxu1 }
 0xea7   :  { %1733 = vmatprep.mubr.f32.mxu1 %v1555_v12  ;;  %v1556_v40 = vmul.f32 %v1549_v14, %v2491_v25 }
 0xea8   :  { %v1551_v15 = vpop.f32.mrf.mxu1  ;;  %1734 = vmatmul.mubr.f32.vlgmr.msra.gmra.mxu1 %v1554_v13 }
 0xea9   :  { %v1557_v16 = vmul.f32 %v1551_v15, %v2493_v26 }
 0xeab   :  { %1738 = vmatprep.mubr.f32.mxu1 %v1557_v16 }
 0xeac   :  { %1739 = vmatmul.mubr.f32.gmra.mxu1 %v1556_v40 }
 0xead   :  { %2102 = shalt.err (!%p2099_p4)
}
 0xeae   :  { %1802 = dma.vmem_to_hbm [thread:$0]  %s1800_s3, 16, %s2690_s13, [#allocation5]   ;;  %v2007_v17 = vpop.f32.mrf.mxu0 }
 0xeaf   :  { %s2146_s17 = smov [#allocation2]  }
 0xeb0   :  { %v1660_v44 = vpop.f32.mrf.mxu0  ;;  %s1786_s18 = sshll.u32 %s2146_s17, 4  ;;  %s1787_s18 = int_to_ptr.vmem [resolvable:$true] %s1786_s18 }
 0xeb1   :  { %s2111_s13 = scalar_lea.vmem %s1787_s18, 256  ;;  %p2116_p6 = scmp.lt.s32.totalorder %s1787_s18, %s1787_s18 }
 0xeb2   :  { %p2112_p5 = scmp.ne.s32.totalorder %s1787_s18, %s2111_s13  ;;  %p2117_p7 = scmp.lt.s32.totalorder %s2111_s13, %s2111_s13 }
 0xeb4   :  { %p2118_p8 = por %p2117_p7, %p2116_p6 }
 0xeb6   :  { %p2119_p9 = pnand %p2118_p8, %p2112_p5 }
 0xf68   :  { %v1930_v21 = vpop.f32.mrf.mxu1 }
 0xf6a   :  { %v1931_v25 = vpop.f32.mrf.mxu1 }
 0xf6b   :  { %v1932_v26 = vadd.f32 %v1931_v25, %v1930_v21 }
 0xf6c   :  { %v1933_v18 = vpop.f32.mrf.mxu1 }
 0xf6d   :  { %v1736_v19 = vadd.f32 %v1932_v26, %v1660_v44 }
 0xf6e   :  { %v1934_v20 = vpop.f32.mrf.mxu1 }
 0xf6f   :  { %v1744_v22 = vadd.f32 %v1736_v19, %v2402_v55  ;;  %v1935_v23 = vadd.f32 %v1934_v20, %v1933_v18 }
 0xf71   :  { %1746 = vst.msk [vmem:[#allocation2] sm:$0xff] %vm49_vm0, %v1744_v22  ;;  %v1741_v24 = vadd.f32 %v2007_v17, %v1935_v23 }
 0xf73   :  { %v1745_v27 = vadd.f32 %v1741_v24, %v2400_v34 }
 0xf75   :  { %1747 = vst.msk [vmem:[#allocation2 + $0x8] sm:$0xff] %vm49_vm0, %v1745_v27 }
 0xf76   :  { %2122 = shalt.err (!%p2119_p9)
}
 0xf77   :  { %s2147_s19 = smov 128   ;;  %s2148_s2 = smov 8  }
 0xf78   :  { %1792 = dma.vmem_to_hbm [thread:$0]  %s1787_s18, 256, %s2689_s12, [#allocation3], %s2147_s19, %s2147_s19, %s2148_s2  }
 0xf79   :  { %2131 = dma.done.wait [#allocation3], 256  }
 0xf7a   :  { %2132 = vsyncadd [#allocation3], 4294967040 }
 0xf7b   :  { %2133 = dma.done.wait [#allocation5], 16  }
 0xf7c   :  { %2134 = vsyncadd [#allocation5], 4294967280 }
 0xf7d   :  { %1809 = vsyncpa [#allocation3], 1 }
 0xf7e   :  { %1810 = vsyncpa [#allocation5], 1 }

</bundles_post_ra>
